<compile_context>
chip_gen: v7x
topology: tpu7x:2x2x1
jax: 0.10.0
libtpu: 0.0.40
codegen_flags: <defaults>
</compile_context>

<pallas_src>
import functools

import jax
import jax.numpy as jnp
from jax.experimental import pallas as pl
from jax.experimental.pallas import tpu as pltpu


# ----------------------------------------------------------------------------
# Fused forward kernel
# ----------------------------------------------------------------------------
def make_fused_kernel(*, N, L, C0, F, K, H, O):
    PAD = K // 2              # BiConv uses padding=K//2; nn.Conv1d 'same' (odd K)
    LP = L + 2 * PAD
    LN = L * N
    PN = PAD * N

    def kernel(x_ref,                 # (L*N, C0)  input rows, l-major / n-minor
               w0_ref, b0_ref,        # (K, C0, 2F), (1, 2F)   [fwd | revcomp]
               w1f_ref, w1r_ref,      # (K, F, F) layer-1 fwd / revcomp weights
               b1f_ref, b1r_ref,      # (1, F), (1, F)  (rev bias is flipped)
               wc_ref, bc_ref,        # (K, 2F, F) = [wc ; wc] (Cin-stacked), (1, F)
               wfc_ref, bfc_ref,      # (L, F, H) permuted fc weight, (1, H)
               scale_ref, shift_ref,  # (1, H) folded BatchNorm1d (eval)
               w2_ref, b2_ref,        # (H, O), (1, O)
               o_ref,                 # (N, O)
               pad0_ref, pad1_ref, pad2_ref, h_ref):   # VMEM scratch
        f32 = jnp.float32

        # ---- zero-pad the input inside VMEM (rows outside [PN, PN+LN) stay 0) ----
        pad0_ref[...] = jnp.zeros_like(pad0_ref)
        pad0_ref[PN:PN + LN, :] = x_ref[...]

        # ---- BiConv layer 0: fwd + reverse-complement fused via Cout concat ------
        acc0 = jnp.zeros((LN, 2 * F), f32)
        for k in range(K):                                    # static taps
            acc0 = acc0 + jnp.dot(pad0_ref[k * N:k * N + LN, :], w0_ref[k],
                                  preferred_element_type=f32)
        a0 = jnp.maximum(acc0 + b0_ref[...], 0.0)             # (LN, 2F) = [xf | xr]

        # ---- BiConv layer 1 (separate weights per branch, shared padded slab) ----
        pad1_ref[...] = jnp.zeros_like(pad1_ref)
        pad1_ref[PN:PN + LN, :] = a0
        accf = jnp.zeros((LN, F), f32)
        accr = jnp.zeros((LN, F), f32)
        for k in range(K):
            accf = accf + jnp.dot(pad1_ref[k * N:k * N + LN, :F], w1f_ref[k],
                                  preferred_element_type=f32)
            accr = accr + jnp.dot(pad1_ref[k * N:k * N + LN, F:], w1r_ref[k],
                                  preferred_element_type=f32)

        # ---- tower output goes straight into the padded slab of the final conv;
        #      the fwd+rev sum is folded into the Cin-stacked conv weight ----------
        pad2_ref[...] = jnp.zeros_like(pad2_ref)
        pad2_ref[PN:PN + LN, :F] = jnp.maximum(accf + b1f_ref[...], 0.0)
        pad2_ref[PN:PN + LN, F:] = jnp.maximum(accr + b1r_ref[...], 0.0)

        acch = jnp.zeros((LN, F), f32)
        for k in range(K):
            acch = acch + jnp.dot(pad2_ref[k * N:k * N + LN, :], wc_ref[k],
                                  preferred_element_type=f32)
        h_ref[...] = jnp.maximum(acch + bc_ref[...], 0.0)     # (LN, F)

        # ---- fc (flatten-free: accumulate over l) -> BN(eval) -> relu -> fc2 -----
        z = jnp.zeros((N, H), f32) + bfc_ref[...]
        for l in range(L):
            z = z + jnp.dot(h_ref[l * N:(l + 1) * N, :], wfc_ref[l],
                            preferred_element_type=f32)
        z = z * scale_ref[...] + shift_ref[...]
        z = jnp.maximum(z, 0.0)
        out = jnp.dot(z, w2_ref[...], preferred_element_type=f32) + b2_ref[...]
        o_ref[...] = out.astype(o_ref.dtype)

    return kernel


# ----------------------------------------------------------------------------
# One-time parameter preprocessing (outside jit / outside the kernel)
# ----------------------------------------------------------------------------
def prepare_params(params, *, L, F, H):
    # "reverse complement": torch.flip(kernel(Cout,Cin,K), dims=[0,1]) ->
    # in our (K, Cin, Cout) layout that is a flip of axes (1, 2).
    revcomp = lambda w: jnp.flip(w, axis=(1, 2))

    w0 = params["w_bc0"]                                          # (K, C0, F)
    w0cat = jnp.concatenate([w0, revcomp(w0)], axis=2)            # (K, C0, 2F)
    b0 = params["b_bc0"]
    b0cat = jnp.concatenate([b0, jnp.flip(b0)]).reshape(1, 2 * F)  # rev bias flipped

    w1f = params["w_bc1"]                                         # (K, F, F)
    w1r = revcomp(w1f)
    b1f = params["b_bc1"].reshape(1, F)
    b1r = jnp.flip(params["b_bc1"]).reshape(1, F)

    wc = params["w_c"]                                            # (K, F, F)
    wc_stack = jnp.concatenate([wc, wc], axis=1)                  # (K, 2F, F)
    bc = params["b_c"].reshape(1, F)

    # fc weight rows follow PyTorch's C-major flatten order (c*L + l);
    # permute once to (L, F, H) so the kernel never transposes activations.
    wfc = params["w1"].reshape(F, L, H).transpose(1, 0, 2)        # (L, F, H)
    bfc = params["b1"].reshape(1, H)

    eps = 1e-5
    scale = params["bn_gamma"] / jnp.sqrt(params["bn_var"] + eps)
    shift = params["bn_beta"] - params["bn_mean"] * scale

    return (w0cat, b0cat, w1f, w1r, b1f, b1r, wc_stack, bc, wfc, bfc,
            scale.reshape(1, H), shift.reshape(1, H),
            params["w2"], params["b2"].reshape(1, -1))


# ----------------------------------------------------------------------------
# Forward wrapper: one transpose on the tiny input, then ONE pallas_call
# ----------------------------------------------------------------------------
@functools.partial(jax.jit, static_argnames=("L", "C0", "F", "K", "H", "O"))
def jores21_forward(x_ncl, prepped, *, L, C0, F, K, H, O):
    N = x_ncl.shape[0]
    # PyTorch NCL -> rows in l-major / n-minor order: (N,C,L) -> (L,N,C) -> (L*N, C)
    x_rows = jnp.transpose(x_ncl, (2, 0, 1)).reshape(L * N, C0).astype(jnp.float32)

    PAD = K // 2
    LP = L + 2 * PAD
    vspec = pl.BlockSpec(memory_space=pltpu.MemorySpace.VMEM)
    kernel = make_fused_kernel(N=N, L=L, C0=C0, F=F, K=K, H=H, O=O)

    return pl.pallas_call(
        kernel,
        out_shape=jax.ShapeDtypeStruct((N, O), jnp.float32),
        in_specs=[vspec] * 15,
        out_specs=vspec,
        scratch_shapes=[
            pltpu.VMEM((LP * N, C0), jnp.float32),      # padded input
            pltpu.VMEM((LP * N, 2 * F), jnp.float32),   # padded [xf1 | xr1]
            pltpu.VMEM((LP * N, 2 * F), jnp.float32),   # padded [xf2 | xr2]
            pltpu.VMEM((L * N, F), jnp.float32),        # conv output h
        ],
    )(x_rows, *prepped)


# ----------------------------------------------------------------------------
# Deterministic parameter construction + run
# ----------------------------------------------------------------------------
def make_params(key, *, input_len, filters, kernel_size, hidden_dim, output_dim):
    ks = jax.random.split(key, 10)
    f32 = jnp.float32
    return {
        # biconv layer 0: (K, 4, F) ; layer 1: (K, F, F)
        "w_bc0": (jax.random.normal(ks[0], (kernel_size, 4, filters)) * 0.10).astype(f32),
        "b_bc0": (jax.random.normal(ks[8], (filters,)) * 0.01).astype(f32),
        "w_bc1": (jax.random.normal(ks[1], (kernel_size, filters, filters)) * 0.05).astype(f32),
        "b_bc1": (jax.random.normal(ks[9], (filters,)) * 0.01).astype(f32),
        # conv: filters -> filters
        "w_c": (jax.random.normal(ks[2], (kernel_size, filters, filters)) * 0.05).astype(f32),
        "b_c": (jax.random.normal(ks[3], (filters,)) * 0.01).astype(f32),
        # fc: (input_len*filters) -> hidden, rows in PyTorch C-major flatten order
        "w1": (jax.random.normal(ks[4], (input_len * filters, hidden_dim)) * 0.02).astype(f32),
        "b1": (jax.random.normal(ks[5], (hidden_dim,)) * 0.01).astype(f32),
        # batchnorm (eval-mode running stats; PyTorch fresh-module defaults)
        "bn_gamma": jnp.ones((hidden_dim,), f32),
        "bn_beta": jnp.zeros((hidden_dim,), f32),
        "bn_mean": jnp.zeros((hidden_dim,), f32),
        "bn_var": jnp.ones((hidden_dim,), f32),
        # fc2: hidden -> output_dim
        "w2": (jax.random.normal(ks[6], (hidden_dim, output_dim)) * 0.05).astype(f32),
        "b2": (jax.random.normal(ks[7], (output_dim,)) * 0.01).astype(f32),
    }


if __name__ == "__main__":
    # small, module-consistent shapes
    N = 2
    input_len = 16       # sequence length L
    in_channels = 4      # one-hot DNA channels
    filters = 16
    kernel_size = 5
    hidden_dim = 32
    output_dim = 4

    key = jax.random.PRNGKey(0)
    k_x, k_p = jax.random.split(key)
    x = jax.random.normal(k_x, (N, in_channels, input_len), dtype=jnp.float32)
    params = make_params(k_p, input_len=input_len, filters=filters,
                         kernel_size=kernel_size, hidden_dim=hidden_dim,
                         output_dim=output_dim)
    prepped = prepare_params(params, L=input_len, F=filters, H=hidden_dim)

    out = jores21_forward(x, prepped, L=input_len, C0=in_channels, F=filters,
                          K=kernel_size, H=hidden_dim, O=output_dim)
    out = jax.block_until_ready(out)
    assert out.shape == (N, output_dim), out.shape
    assert bool(jnp.all(jnp.isfinite(out)))
    print("KERNEL_OK")
</pallas_src>

<mosaic_0001>
module attributes {stable_mosaic.version = 11 : i64} {
  func.func @kernel(%arg0: memref<32x4xf32, #tpu.memory_space<vmem>>, %arg1: memref<5x4x32xf32, #tpu.memory_space<vmem>>, %arg2: memref<1x32xf32, #tpu.memory_space<vmem>>, %arg3: memref<5x16x16xf32, #tpu.memory_space<vmem>>, %arg4: memref<5x16x16xf32, #tpu.memory_space<vmem>>, %arg5: memref<1x16xf32, #tpu.memory_space<vmem>>, %arg6: memref<1x16xf32, #tpu.memory_space<vmem>>, %arg7: memref<5x32x16xf32, #tpu.memory_space<vmem>>, %arg8: memref<1x16xf32, #tpu.memory_space<vmem>>, %arg9: memref<16x16x32xf32, #tpu.memory_space<vmem>>, %arg10: memref<1x32xf32, #tpu.memory_space<vmem>>, %arg11: memref<1x32xf32, #tpu.memory_space<vmem>>, %arg12: memref<1x32xf32, #tpu.memory_space<vmem>>, %arg13: memref<32x4xf32, #tpu.memory_space<vmem>>, %arg14: memref<1x4xf32, #tpu.memory_space<vmem>>, %arg15: memref<2x4xf32, #tpu.memory_space<vmem>>, %arg16: memref<40x4xf32, #tpu.memory_space<vmem>>, %arg17: memref<40x32xf32, #tpu.memory_space<vmem>>, %arg18: memref<40x32xf32, #tpu.memory_space<vmem>>, %arg19: memref<32x16xf32, #tpu.memory_space<vmem>>) attributes {dimension_semantics = [], scalar_prefetch = 0 : i64, scratch_operands = 4 : i64, tpu.core_type = #tpu.core_type<tc>} {
    %cst = arith.constant 0.000000e+00 : f32
    %0 = vector.broadcast %cst : f32 to vector<40x4xf32>
    %c0 = arith.constant 0 : index
    %c0_0 = arith.constant 0 : index
    %1 = vector.load %arg16[%c0, %c0_0] : memref<40x4xf32, #tpu.memory_space<vmem>>, vector<40x4xf32>
    tpu.vector_store %arg16[%c0, %c0_0], %0 {strides = array<i32>} : memref<40x4xf32, #tpu.memory_space<vmem>>, vector<40x4xf32>,
    %c0_1 = arith.constant 0 : index
    %c0_2 = arith.constant 0 : index
    %2 = vector.load %arg0[%c0_1, %c0_2] : memref<32x4xf32, #tpu.memory_space<vmem>>, vector<32x4xf32>
    %c4 = arith.constant 4 : index
    %c0_3 = arith.constant 0 : index
    %3 = vector.load %arg16[%c4, %c0_3] : memref<40x4xf32, #tpu.memory_space<vmem>>, vector<32x4xf32>
    tpu.vector_store %arg16[%c4, %c0_3], %2 {strides = array<i32>} : memref<40x4xf32, #tpu.memory_space<vmem>>, vector<32x4xf32>,
    %cst_4 = arith.constant 0.000000e+00 : f32
    %4 = vector.broadcast %cst_4 : f32 to vector<32x32xf32>
    %c0_5 = arith.constant 0 : index
    %c0_6 = arith.constant 0 : index
    %5 = vector.load %arg16[%c0_5, %c0_6] : memref<40x4xf32, #tpu.memory_space<vmem>>, vector<32x4xf32>
    %c0_7 = arith.constant 0 : index
    %c0_8 = arith.constant 0 : index
    %c0_9 = arith.constant 0 : index
    %6 = vector.load %arg1[%c0_7, %c0_8, %c0_9] : memref<5x4x32xf32, #tpu.memory_space<vmem>>, vector<1x4x32xf32>
    %7 = vector.shape_cast %6 : vector<1x4x32xf32> to vector<4x32xf32>
    %cst_10 = arith.constant dense<0.000000e+00> : vector<32x32xf32>
    %8 = tpu.matmul %5, %7, %cst_10 {dimension_numbers = #tpu.dot_dimension_numbers<[1], [0], [0], [1], [0, 0, 1, 1], [], []>} : vector<32x4xf32>, vector<4x32xf32>, vector<32x32xf32> -> vector<32x32xf32>
    %9 = arith.addf %4, %8 : vector<32x32xf32>
    %c2 = arith.constant 2 : index
    %c0_11 = arith.constant 0 : index
    %10 = vector.load %arg16[%c2, %c0_11] : memref<40x4xf32, #tpu.memory_space<vmem>>, vector<32x4xf32>
    %c1 = arith.constant 1 : index
    %c0_12 = arith.constant 0 : index
    %c0_13 = arith.constant 0 : index
    %11 = vector.load %arg1[%c1, %c0_12, %c0_13] : memref<5x4x32xf32, #tpu.memory_space<vmem>>, vector<1x4x32xf32>
    %12 = vector.shape_cast %11 : vector<1x4x32xf32> to vector<4x32xf32>
    %cst_14 = arith.constant dense<0.000000e+00> : vector<32x32xf32>
    %13 = tpu.matmul %10, %12, %cst_14 {dimension_numbers = #tpu.dot_dimension_numbers<[1], [0], [0], [1], [0, 0, 1, 1], [], []>} : vector<32x4xf32>, vector<4x32xf32>, vector<32x32xf32> -> vector<32x32xf32>
    %14 = arith.addf %9, %13 : vector<32x32xf32>
    %c4_15 = arith.constant 4 : index
    %c0_16 = arith.constant 0 : index
    %15 = vector.load %arg16[%c4_15, %c0_16] : memref<40x4xf32, #tpu.memory_space<vmem>>, vector<32x4xf32>
    %c2_17 = arith.constant 2 : index
    %c0_18 = arith.constant 0 : index
    %c0_19 = arith.constant 0 : index
    %16 = vector.load %arg1[%c2_17, %c0_18, %c0_19] : memref<5x4x32xf32, #tpu.memory_space<vmem>>, vector<1x4x32xf32>
    %17 = vector.shape_cast %16 : vector<1x4x32xf32> to vector<4x32xf32>
    %cst_20 = arith.constant dense<0.000000e+00> : vector<32x32xf32>
    %18 = tpu.matmul %15, %17, %cst_20 {dimension_numbers = #tpu.dot_dimension_numbers<[1], [0], [0], [1], [0, 0, 1, 1], [], []>} : vector<32x4xf32>, vector<4x32xf32>, vector<32x32xf32> -> vector<32x32xf32>
    %19 = arith.addf %14, %18 : vector<32x32xf32>
    %c6 = arith.constant 6 : index
    %c0_21 = arith.constant 0 : index
    %20 = vector.load %arg16[%c6, %c0_21] : memref<40x4xf32, #tpu.memory_space<vmem>>, vector<32x4xf32>
    %c3 = arith.constant 3 : index
    %c0_22 = arith.constant 0 : index
    %c0_23 = arith.constant 0 : index
    %21 = vector.load %arg1[%c3, %c0_22, %c0_23] : memref<5x4x32xf32, #tpu.memory_space<vmem>>, vector<1x4x32xf32>
    %22 = vector.shape_cast %21 : vector<1x4x32xf32> to vector<4x32xf32>
    %cst_24 = arith.constant dense<0.000000e+00> : vector<32x32xf32>
    %23 = tpu.matmul %20, %22, %cst_24 {dimension_numbers = #tpu.dot_dimension_numbers<[1], [0], [0], [1], [0, 0, 1, 1], [], []>} : vector<32x4xf32>, vector<4x32xf32>, vector<32x32xf32> -> vector<32x32xf32>
    %24 = arith.addf %19, %23 : vector<32x32xf32>
    %c8 = arith.constant 8 : index
    %c0_25 = arith.constant 0 : index
    %25 = vector.load %arg16[%c8, %c0_25] : memref<40x4xf32, #tpu.memory_space<vmem>>, vector<32x4xf32>
    %c4_26 = arith.constant 4 : index
    %c0_27 = arith.constant 0 : index
    %c0_28 = arith.constant 0 : index
    %26 = vector.load %arg1[%c4_26, %c0_27, %c0_28] : memref<5x4x32xf32, #tpu.memory_space<vmem>>, vector<1x4x32xf32>
    %27 = vector.shape_cast %26 : vector<1x4x32xf32> to vector<4x32xf32>
    %cst_29 = arith.constant dense<0.000000e+00> : vector<32x32xf32>
    %28 = tpu.matmul %25, %27, %cst_29 {dimension_numbers = #tpu.dot_dimension_numbers<[1], [0], [0], [1], [0, 0, 1, 1], [], []>} : vector<32x4xf32>, vector<4x32xf32>, vector<32x32xf32> -> vector<32x32xf32>
    %29 = arith.addf %24, %28 : vector<32x32xf32>
    %c0_30 = arith.constant 0 : index
    %c0_31 = arith.constant 0 : index
    %30 = vector.load %arg2[%c0_30, %c0_31] : memref<1x32xf32, #tpu.memory_space<vmem>>, vector<1x32xf32>
    %31 = vector.broadcast %30 : vector<1x32xf32> to vector<32x32xf32>
    %32 = arith.addf %29, %31 : vector<32x32xf32>
    %cst_32 = arith.constant 0.000000e+00 : f32
    %33 = vector.broadcast %cst_32 : f32 to vector<32x32xf32>
    %34 = arith.maximumf %32, %33 : vector<32x32xf32>
    %cst_33 = arith.constant 0.000000e+00 : f32
    %35 = vector.broadcast %cst_33 : f32 to vector<40x32xf32>
    %c0_34 = arith.constant 0 : index
    %c0_35 = arith.constant 0 : index
    %36 = vector.load %arg17[%c0_34, %c0_35] : memref<40x32xf32, #tpu.memory_space<vmem>>, vector<40x32xf32>
    tpu.vector_store %arg17[%c0_34, %c0_35], %35 {strides = array<i32>} : memref<40x32xf32, #tpu.memory_space<vmem>>, vector<40x32xf32>,
    %c4_36 = arith.constant 4 : index
    %c0_37 = arith.constant 0 : index
    %37 = vector.load %arg17[%c4_36, %c0_37] : memref<40x32xf32, #tpu.memory_space<vmem>>, vector<32x32xf32>
    tpu.vector_store %arg17[%c4_36, %c0_37], %34 {strides = array<i32>} : memref<40x32xf32, #tpu.memory_space<vmem>>, vector<32x32xf32>,
    %cst_38 = arith.constant 0.000000e+00 : f32
    %38 = vector.broadcast %cst_38 : f32 to vector<32x16xf32>
    %cst_39 = arith.constant 0.000000e+00 : f32
    %39 = vector.broadcast %cst_39 : f32 to vector<32x16xf32>
    %c0_40 = arith.constant 0 : index
    %c0_41 = arith.constant 0 : index
    %40 = vector.load %arg17[%c0_40, %c0_41] : memref<40x32xf32, #tpu.memory_space<vmem>>, vector<32x16xf32>
    %c0_42 = arith.constant 0 : index
    %c0_43 = arith.constant 0 : index
    %c0_44 = arith.constant 0 : index
    %41 = vector.load %arg3[%c0_42, %c0_43, %c0_44] : memref<5x16x16xf32, #tpu.memory_space<vmem>>, vector<1x16x16xf32>
    %42 = vector.shape_cast %41 : vector<1x16x16xf32> to vector<16x16xf32>
    %cst_45 = arith.constant dense<0.000000e+00> : vector<32x16xf32>
    %43 = tpu.matmul %40, %42, %cst_45 {dimension_numbers = #tpu.dot_dimension_numbers<[1], [0], [0], [1], [0, 0, 1, 1], [], []>} : vector<32x16xf32>, vector<16x16xf32>, vector<32x16xf32> -> vector<32x16xf32>
    %44 = arith.addf %38, %43 : vector<32x16xf32>
    %c0_46 = arith.constant 0 : index
    %c16 = arith.constant 16 : index
    %45 = vector.load %arg17[%c0_46, %c16] : memref<40x32xf32, #tpu.memory_space<vmem>>, vector<32x16xf32>
    %c0_47 = arith.constant 0 : index
    %c0_48 = arith.constant 0 : index
    %c0_49 = arith.constant 0 : index
    %46 = vector.load %arg4[%c0_47, %c0_48, %c0_49] : memref<5x16x16xf32, #tpu.memory_space<vmem>>, vector<1x16x16xf32>
    %47 = vector.shape_cast %46 : vector<1x16x16xf32> to vector<16x16xf32>
    %cst_50 = arith.constant dense<0.000000e+00> : vector<32x16xf32>
    %48 = tpu.matmul %45, %47, %cst_50 {dimension_numbers = #tpu.dot_dimension_numbers<[1], [0], [0], [1], [0, 0, 1, 1], [], []>} : vector<32x16xf32>, vector<16x16xf32>, vector<32x16xf32> -> vector<32x16xf32>
    %49 = arith.addf %39, %48 : vector<32x16xf32>
    %c2_51 = arith.constant 2 : index
    %c0_52 = arith.constant 0 : index
    %50 = vector.load %arg17[%c2_51, %c0_52] : memref<40x32xf32, #tpu.memory_space<vmem>>, vector<32x16xf32>
    %c1_53 = arith.constant 1 : index
    %c0_54 = arith.constant 0 : index
    %c0_55 = arith.constant 0 : index
    %51 = vector.load %arg3[%c1_53, %c0_54, %c0_55] : memref<5x16x16xf32, #tpu.memory_space<vmem>>, vector<1x16x16xf32>
    %52 = vector.shape_cast %51 : vector<1x16x16xf32> to vector<16x16xf32>
    %cst_56 = arith.constant dense<0.000000e+00> : vector<32x16xf32>
    %53 = tpu.matmul %50, %52, %cst_56 {dimension_numbers = #tpu.dot_dimension_numbers<[1], [0], [0], [1], [0, 0, 1, 1], [], []>} : vector<32x16xf32>, vector<16x16xf32>, vector<32x16xf32> -> vector<32x16xf32>
    %54 = arith.addf %44, %53 : vector<32x16xf32>
    %c2_57 = arith.constant 2 : index
    %c16_58 = arith.constant 16 : index
    %55 = vector.load %arg17[%c2_57, %c16_58] : memref<40x32xf32, #tpu.memory_space<vmem>>, vector<32x16xf32>
    %c1_59 = arith.constant 1 : index
    %c0_60 = arith.constant 0 : index
    %c0_61 = arith.constant 0 : index
    %56 = vector.load %arg4[%c1_59, %c0_60, %c0_61] : memref<5x16x16xf32, #tpu.memory_space<vmem>>, vector<1x16x16xf32>
    %57 = vector.shape_cast %56 : vector<1x16x16xf32> to vector<16x16xf32>
    %cst_62 = arith.constant dense<0.000000e+00> : vector<32x16xf32>
    %58 = tpu.matmul %55, %57, %cst_62 {dimension_numbers = #tpu.dot_dimension_numbers<[1], [0], [0], [1], [0, 0, 1, 1], [], []>} : vector<32x16xf32>, vector<16x16xf32>, vector<32x16xf32> -> vector<32x16xf32>
    %59 = arith.addf %49, %58 : vector<32x16xf32>
    %c4_63 = arith.constant 4 : index
    %c0_64 = arith.constant 0 : index
    %60 = vector.load %arg17[%c4_63, %c0_64] : memref<40x32xf32, #tpu.memory_space<vmem>>, vector<32x16xf32>
    %c2_65 = arith.constant 2 : index
    %c0_66 = arith.constant 0 : index
    %c0_67 = arith.constant 0 : index
    %61 = vector.load %arg3[%c2_65, %c0_66, %c0_67] : memref<5x16x16xf32, #tpu.memory_space<vmem>>, vector<1x16x16xf32>
    %62 = vector.shape_cast %61 : vector<1x16x16xf32> to vector<16x16xf32>
    %cst_68 = arith.constant dense<0.000000e+00> : vector<32x16xf32>
    %63 = tpu.matmul %60, %62, %cst_68 {dimension_numbers = #tpu.dot_dimension_numbers<[1], [0], [0], [1], [0, 0, 1, 1], [], []>} : vector<32x16xf32>, vector<16x16xf32>, vector<32x16xf32> -> vector<32x16xf32>
    %64 = arith.addf %54, %63 : vector<32x16xf32>
    %c4_69 = arith.constant 4 : index
    %c16_70 = arith.constant 16 : index
    %65 = vector.load %arg17[%c4_69, %c16_70] : memref<40x32xf32, #tpu.memory_space<vmem>>, vector<32x16xf32>
    %c2_71 = arith.constant 2 : index
    %c0_72 = arith.constant 0 : index
    %c0_73 = arith.constant 0 : index
    %66 = vector.load %arg4[%c2_71, %c0_72, %c0_73] : memref<5x16x16xf32, #tpu.memory_space<vmem>>, vector<1x16x16xf32>
    %67 = vector.shape_cast %66 : vector<1x16x16xf32> to vector<16x16xf32>
    %cst_74 = arith.constant dense<0.000000e+00> : vector<32x16xf32>
    %68 = tpu.matmul %65, %67, %cst_74 {dimension_numbers = #tpu.dot_dimension_numbers<[1], [0], [0], [1], [0, 0, 1, 1], [], []>} : vector<32x16xf32>, vector<16x16xf32>, vector<32x16xf32> -> vector<32x16xf32>
    %69 = arith.addf %59, %68 : vector<32x16xf32>
    %c6_75 = arith.constant 6 : index
    %c0_76 = arith.constant 0 : index
    %70 = vector.load %arg17[%c6_75, %c0_76] : memref<40x32xf32, #tpu.memory_space<vmem>>, vector<32x16xf32>
    %c3_77 = arith.constant 3 : index
    %c0_78 = arith.constant 0 : index
    %c0_79 = arith.constant 0 : index
    %71 = vector.load %arg3[%c3_77, %c0_78, %c0_79] : memref<5x16x16xf32, #tpu.memory_space<vmem>>, vector<1x16x16xf32>
    %72 = vector.shape_cast %71 : vector<1x16x16xf32> to vector<16x16xf32>
    %cst_80 = arith.constant dense<0.000000e+00> : vector<32x16xf32>
    %73 = tpu.matmul %70, %72, %cst_80 {dimension_numbers = #tpu.dot_dimension_numbers<[1], [0], [0], [1], [0, 0, 1, 1], [], []>} : vector<32x16xf32>, vector<16x16xf32>, vector<32x16xf32> -> vector<32x16xf32>
    %74 = arith.addf %64, %73 : vector<32x16xf32>
    %c6_81 = arith.constant 6 : index
    %c16_82 = arith.constant 16 : index
    %75 = vector.load %arg17[%c6_81, %c16_82] : memref<40x32xf32, #tpu.memory_space<vmem>>, vector<32x16xf32>
    %c3_83 = arith.constant 3 : index
    %c0_84 = arith.constant 0 : index
    %c0_85 = arith.constant 0 : index
    %76 = vector.load %arg4[%c3_83, %c0_84, %c0_85] : memref<5x16x16xf32, #tpu.memory_space<vmem>>, vector<1x16x16xf32>
    %77 = vector.shape_cast %76 : vector<1x16x16xf32> to vector<16x16xf32>
    %cst_86 = arith.constant dense<0.000000e+00> : vector<32x16xf32>
    %78 = tpu.matmul %75, %77, %cst_86 {dimension_numbers = #tpu.dot_dimension_numbers<[1], [0], [0], [1], [0, 0, 1, 1], [], []>} : vector<32x16xf32>, vector<16x16xf32>, vector<32x16xf32> -> vector<32x16xf32>
    %79 = arith.addf %69, %78 : vector<32x16xf32>
    %c8_87 = arith.constant 8 : index
    %c0_88 = arith.constant 0 : index
    %80 = vector.load %arg17[%c8_87, %c0_88] : memref<40x32xf32, #tpu.memory_space<vmem>>, vector<32x16xf32>
    %c4_89 = arith.constant 4 : index
    %c0_90 = arith.constant 0 : index
    %c0_91 = arith.constant 0 : index
    %81 = vector.load %arg3[%c4_89, %c0_90, %c0_91] : memref<5x16x16xf32, #tpu.memory_space<vmem>>, vector<1x16x16xf32>
    %82 = vector.shape_cast %81 : vector<1x16x16xf32> to vector<16x16xf32>
    %cst_92 = arith.constant dense<0.000000e+00> : vector<32x16xf32>
    %83 = tpu.matmul %80, %82, %cst_92 {dimension_numbers = #tpu.dot_dimension_numbers<[1], [0], [0], [1], [0, 0, 1, 1], [], []>} : vector<32x16xf32>, vector<16x16xf32>, vector<32x16xf32> -> vector<32x16xf32>
    %84 = arith.addf %74, %83 : vector<32x16xf32>
    %c8_93 = arith.constant 8 : index
    %c16_94 = arith.constant 16 : index
    %85 = vector.load %arg17[%c8_93, %c16_94] : memref<40x32xf32, #tpu.memory_space<vmem>>, vector<32x16xf32>
    %c4_95 = arith.constant 4 : index
    %c0_96 = arith.constant 0 : index
    %c0_97 = arith.constant 0 : index
    %86 = vector.load %arg4[%c4_95, %c0_96, %c0_97] : memref<5x16x16xf32, #tpu.memory_space<vmem>>, vector<1x16x16xf32>
    %87 = vector.shape_cast %86 : vector<1x16x16xf32> to vector<16x16xf32>
    %cst_98 = arith.constant dense<0.000000e+00> : vector<32x16xf32>
    %88 = tpu.matmul %85, %87, %cst_98 {dimension_numbers = #tpu.dot_dimension_numbers<[1], [0], [0], [1], [0, 0, 1, 1], [], []>} : vector<32x16xf32>, vector<16x16xf32>, vector<32x16xf32> -> vector<32x16xf32>
    %89 = arith.addf %79, %88 : vector<32x16xf32>
    %cst_99 = arith.constant 0.000000e+00 : f32
    %90 = vector.broadcast %cst_99 : f32 to vector<40x32xf32>
    %c0_100 = arith.constant 0 : index
    %c0_101 = arith.constant 0 : index
    %91 = vector.load %arg18[%c0_100, %c0_101] : memref<40x32xf32, #tpu.memory_space<vmem>>, vector<40x32xf32>
    tpu.vector_store %arg18[%c0_100, %c0_101], %90 {strides = array<i32>} : memref<40x32xf32, #tpu.memory_space<vmem>>, vector<40x32xf32>,
    %c0_102 = arith.constant 0 : index
    %c0_103 = arith.constant 0 : index
    %92 = vector.load %arg5[%c0_102, %c0_103] : memref<1x16xf32, #tpu.memory_space<vmem>>, vector<1x16xf32>
    %93 = vector.broadcast %92 : vector<1x16xf32> to vector<32x16xf32>
    %94 = arith.addf %84, %93 : vector<32x16xf32>
    %cst_104 = arith.constant 0.000000e+00 : f32
    %95 = vector.broadcast %cst_104 : f32 to vector<32x16xf32>
    %96 = arith.maximumf %94, %95 : vector<32x16xf32>
    %c4_105 = arith.constant 4 : index
    %c0_106 = arith.constant 0 : index
    %97 = vector.load %arg18[%c4_105, %c0_106] : memref<40x32xf32, #tpu.memory_space<vmem>>, vector<32x16xf32>
    tpu.vector_store %arg18[%c4_105, %c0_106], %96 {strides = array<i32>} : memref<40x32xf32, #tpu.memory_space<vmem>>, vector<32x16xf32>,
    %c0_107 = arith.constant 0 : index
    %c0_108 = arith.constant 0 : index
    %98 = vector.load %arg6[%c0_107, %c0_108] : memref<1x16xf32, #tpu.memory_space<vmem>>, vector<1x16xf32>
    %99 = vector.broadcast %98 : vector<1x16xf32> to vector<32x16xf32>
    %100 = arith.addf %89, %99 : vector<32x16xf32>
    %cst_109 = arith.constant 0.000000e+00 : f32
    %101 = vector.broadcast %cst_109 : f32 to vector<32x16xf32>
    %102 = arith.maximumf %100, %101 : vector<32x16xf32>
    %c4_110 = arith.constant 4 : index
    %c16_111 = arith.constant 16 : index
    %103 = vector.load %arg18[%c4_110, %c16_111] : memref<40x32xf32, #tpu.memory_space<vmem>>, vector<32x16xf32>
    tpu.vector_store %arg18[%c4_110, %c16_111], %102 {strides = array<i32>} : memref<40x32xf32, #tpu.memory_space<vmem>>, vector<32x16xf32>,
    %cst_112 = arith.constant 0.000000e+00 : f32
    %104 = vector.broadcast %cst_112 : f32 to vector<32x16xf32>
    %c0_113 = arith.constant 0 : index
    %c0_114 = arith.constant 0 : index
    %105 = vector.load %arg18[%c0_113, %c0_114] : memref<40x32xf32, #tpu.memory_space<vmem>>, vector<32x32xf32>
    %c0_115 = arith.constant 0 : index
    %c0_116 = arith.constant 0 : index
    %c0_117 = arith.constant 0 : index
    %106 = vector.load %arg7[%c0_115, %c0_116, %c0_117] : memref<5x32x16xf32, #tpu.memory_space<vmem>>, vector<1x32x16xf32>
    %107 = vector.shape_cast %106 : vector<1x32x16xf32> to vector<32x16xf32>
    %cst_118 = arith.constant dense<0.000000e+00> : vector<32x16xf32>
    %108 = tpu.matmul %105, %107, %cst_118 {dimension_numbers = #tpu.dot_dimension_numbers<[1], [0], [0], [1], [0, 0, 1, 1], [], []>} : vector<32x32xf32>, vector<32x16xf32>, vector<32x16xf32> -> vector<32x16xf32>
    %109 = arith.addf %104, %108 : vector<32x16xf32>
    %c2_119 = arith.constant 2 : index
    %c0_120 = arith.constant 0 : index
    %110 = vector.load %arg18[%c2_119, %c0_120] : memref<40x32xf32, #tpu.memory_space<vmem>>, vector<32x32xf32>
    %c1_121 = arith.constant 1 : index
    %c0_122 = arith.constant 0 : index
    %c0_123 = arith.constant 0 : index
    %111 = vector.load %arg7[%c1_121, %c0_122, %c0_123] : memref<5x32x16xf32, #tpu.memory_space<vmem>>, vector<1x32x16xf32>
    %112 = vector.shape_cast %111 : vector<1x32x16xf32> to vector<32x16xf32>
    %cst_124 = arith.constant dense<0.000000e+00> : vector<32x16xf32>
    %113 = tpu.matmul %110, %112, %cst_124 {dimension_numbers = #tpu.dot_dimension_numbers<[1], [0], [0], [1], [0, 0, 1, 1], [], []>} : vector<32x32xf32>, vector<32x16xf32>, vector<32x16xf32> -> vector<32x16xf32>
    %114 = arith.addf %109, %113 : vector<32x16xf32>
    %c4_125 = arith.constant 4 : index
    %c0_126 = arith.constant 0 : index
    %115 = vector.load %arg18[%c4_125, %c0_126] : memref<40x32xf32, #tpu.memory_space<vmem>>, vector<32x32xf32>
    %c2_127 = arith.constant 2 : index
    %c0_128 = arith.constant 0 : index
    %c0_129 = arith.constant 0 : index
    %116 = vector.load %arg7[%c2_127, %c0_128, %c0_129] : memref<5x32x16xf32, #tpu.memory_space<vmem>>, vector<1x32x16xf32>
    %117 = vector.shape_cast %116 : vector<1x32x16xf32> to vector<32x16xf32>
    %cst_130 = arith.constant dense<0.000000e+00> : vector<32x16xf32>
    %118 = tpu.matmul %115, %117, %cst_130 {dimension_numbers = #tpu.dot_dimension_numbers<[1], [0], [0], [1], [0, 0, 1, 1], [], []>} : vector<32x32xf32>, vector<32x16xf32>, vector<32x16xf32> -> vector<32x16xf32>
    %119 = arith.addf %114, %118 : vector<32x16xf32>
    %c6_131 = arith.constant 6 : index
    %c0_132 = arith.constant 0 : index
    %120 = vector.load %arg18[%c6_131, %c0_132] : memref<40x32xf32, #tpu.memory_space<vmem>>, vector<32x32xf32>
    %c3_133 = arith.constant 3 : index
    %c0_134 = arith.constant 0 : index
    %c0_135 = arith.constant 0 : index
    %121 = vector.load %arg7[%c3_133, %c0_134, %c0_135] : memref<5x32x16xf32, #tpu.memory_space<vmem>>, vector<1x32x16xf32>
    %122 = vector.shape_cast %121 : vector<1x32x16xf32> to vector<32x16xf32>
    %cst_136 = arith.constant dense<0.000000e+00> : vector<32x16xf32>
    %123 = tpu.matmul %120, %122, %cst_136 {dimension_numbers = #tpu.dot_dimension_numbers<[1], [0], [0], [1], [0, 0, 1, 1], [], []>} : vector<32x32xf32>, vector<32x16xf32>, vector<32x16xf32> -> vector<32x16xf32>
    %124 = arith.addf %119, %123 : vector<32x16xf32>
    %c8_137 = arith.constant 8 : index
    %c0_138 = arith.constant 0 : index
    %125 = vector.load %arg18[%c8_137, %c0_138] : memref<40x32xf32, #tpu.memory_space<vmem>>, vector<32x32xf32>
    %c4_139 = arith.constant 4 : index
    %c0_140 = arith.constant 0 : index
    %c0_141 = arith.constant 0 : index
    %126 = vector.load %arg7[%c4_139, %c0_140, %c0_141] : memref<5x32x16xf32, #tpu.memory_space<vmem>>, vector<1x32x16xf32>
    %127 = vector.shape_cast %126 : vector<1x32x16xf32> to vector<32x16xf32>
    %cst_142 = arith.constant dense<0.000000e+00> : vector<32x16xf32>
    %128 = tpu.matmul %125, %127, %cst_142 {dimension_numbers = #tpu.dot_dimension_numbers<[1], [0], [0], [1], [0, 0, 1, 1], [], []>} : vector<32x32xf32>, vector<32x16xf32>, vector<32x16xf32> -> vector<32x16xf32>
    %129 = arith.addf %124, %128 : vector<32x16xf32>
    %c0_143 = arith.constant 0 : index
    %c0_144 = arith.constant 0 : index
    %130 = vector.load %arg8[%c0_143, %c0_144] : memref<1x16xf32, #tpu.memory_space<vmem>>, vector<1x16xf32>
    %131 = vector.broadcast %130 : vector<1x16xf32> to vector<32x16xf32>
    %132 = arith.addf %129, %131 : vector<32x16xf32>
    %cst_145 = arith.constant 0.000000e+00 : f32
    %133 = vector.broadcast %cst_145 : f32 to vector<32x16xf32>
    %134 = arith.maximumf %132, %133 : vector<32x16xf32>
    %c0_146 = arith.constant 0 : index
    %c0_147 = arith.constant 0 : index
    %135 = vector.load %arg19[%c0_146, %c0_147] : memref<32x16xf32, #tpu.memory_space<vmem>>, vector<32x16xf32>
    tpu.vector_store %arg19[%c0_146, %c0_147], %134 {strides = array<i32>} : memref<32x16xf32, #tpu.memory_space<vmem>>, vector<32x16xf32>,
    %cst_148 = arith.constant 0.000000e+00 : f32
    %136 = vector.broadcast %cst_148 : f32 to vector<2x32xf32>
    %c0_149 = arith.constant 0 : index
    %c0_150 = arith.constant 0 : index
    %137 = vector.load %arg10[%c0_149, %c0_150] : memref<1x32xf32, #tpu.memory_space<vmem>>, vector<1x32xf32>
    %138 = vector.broadcast %137 : vector<1x32xf32> to vector<2x32xf32>
    %139 = arith.addf %136, %138 : vector<2x32xf32>
    %c0_151 = arith.constant 0 : index
    %c0_152 = arith.constant 0 : index
    %140 = vector.load %arg19[%c0_151, %c0_152] : memref<32x16xf32, #tpu.memory_space<vmem>>, vector<2x16xf32>
    %c0_153 = arith.constant 0 : index
    %c0_154 = arith.constant 0 : index
    %c0_155 = arith.constant 0 : index
    %141 = vector.load %arg9[%c0_153, %c0_154, %c0_155] : memref<16x16x32xf32, #tpu.memory_space<vmem>>, vector<1x16x32xf32>
    %142 = vector.shape_cast %141 : vector<1x16x32xf32> to vector<16x32xf32>
    %cst_156 = arith.constant dense<0.000000e+00> : vector<2x32xf32>
    %143 = tpu.matmul %140, %142, %cst_156 {dimension_numbers = #tpu.dot_dimension_numbers<[1], [0], [0], [1], [0, 0, 1, 1], [], []>} : vector<2x16xf32>, vector<16x32xf32>, vector<2x32xf32> -> vector<2x32xf32>
    %144 = arith.addf %139, %143 : vector<2x32xf32>
    %c2_157 = arith.constant 2 : index
    %c0_158 = arith.constant 0 : index
    %145 = vector.load %arg19[%c2_157, %c0_158] : memref<32x16xf32, #tpu.memory_space<vmem>>, vector<2x16xf32>
    %c1_159 = arith.constant 1 : index
    %c0_160 = arith.constant 0 : index
    %c0_161 = arith.constant 0 : index
    %146 = vector.load %arg9[%c1_159, %c0_160, %c0_161] : memref<16x16x32xf32, #tpu.memory_space<vmem>>, vector<1x16x32xf32>
    %147 = vector.shape_cast %146 : vector<1x16x32xf32> to vector<16x32xf32>
    %cst_162 = arith.constant dense<0.000000e+00> : vector<2x32xf32>
    %148 = tpu.matmul %145, %147, %cst_162 {dimension_numbers = #tpu.dot_dimension_numbers<[1], [0], [0], [1], [0, 0, 1, 1], [], []>} : vector<2x16xf32>, vector<16x32xf32>, vector<2x32xf32> -> vector<2x32xf32>
    %149 = arith.addf %144, %148 : vector<2x32xf32>
    %c4_163 = arith.constant 4 : index
    %c0_164 = arith.constant 0 : index
    %150 = vector.load %arg19[%c4_163, %c0_164] : memref<32x16xf32, #tpu.memory_space<vmem>>, vector<2x16xf32>
    %c2_165 = arith.constant 2 : index
    %c0_166 = arith.constant 0 : index
    %c0_167 = arith.constant 0 : index
    %151 = vector.load %arg9[%c2_165, %c0_166, %c0_167] : memref<16x16x32xf32, #tpu.memory_space<vmem>>, vector<1x16x32xf32>
    %152 = vector.shape_cast %151 : vector<1x16x32xf32> to vector<16x32xf32>
    %cst_168 = arith.constant dense<0.000000e+00> : vector<2x32xf32>
    %153 = tpu.matmul %150, %152, %cst_168 {dimension_numbers = #tpu.dot_dimension_numbers<[1], [0], [0], [1], [0, 0, 1, 1], [], []>} : vector<2x16xf32>, vector<16x32xf32>, vector<2x32xf32> -> vector<2x32xf32>
    %154 = arith.addf %149, %153 : vector<2x32xf32>
    %c6_169 = arith.constant 6 : index
    %c0_170 = arith.constant 0 : index
    %155 = vector.load %arg19[%c6_169, %c0_170] : memref<32x16xf32, #tpu.memory_space<vmem>>, vector<2x16xf32>
    %c3_171 = arith.constant 3 : index
    %c0_172 = arith.constant 0 : index
    %c0_173 = arith.constant 0 : index
    %156 = vector.load %arg9[%c3_171, %c0_172, %c0_173] : memref<16x16x32xf32, #tpu.memory_space<vmem>>, vector<1x16x32xf32>
    %157 = vector.shape_cast %156 : vector<1x16x32xf32> to vector<16x32xf32>
    %cst_174 = arith.constant dense<0.000000e+00> : vector<2x32xf32>
    %158 = tpu.matmul %155, %157, %cst_174 {dimension_numbers = #tpu.dot_dimension_numbers<[1], [0], [0], [1], [0, 0, 1, 1], [], []>} : vector<2x16xf32>, vector<16x32xf32>, vector<2x32xf32> -> vector<2x32xf32>
    %159 = arith.addf %154, %158 : vector<2x32xf32>
    %c8_175 = arith.constant 8 : index
    %c0_176 = arith.constant 0 : index
    %160 = vector.load %arg19[%c8_175, %c0_176] : memref<32x16xf32, #tpu.memory_space<vmem>>, vector<2x16xf32>
    %c4_177 = arith.constant 4 : index
    %c0_178 = arith.constant 0 : index
    %c0_179 = arith.constant 0 : index
    %161 = vector.load %arg9[%c4_177, %c0_178, %c0_179] : memref<16x16x32xf32, #tpu.memory_space<vmem>>, vector<1x16x32xf32>
    %162 = vector.shape_cast %161 : vector<1x16x32xf32> to vector<16x32xf32>
    %cst_180 = arith.constant dense<0.000000e+00> : vector<2x32xf32>
    %163 = tpu.matmul %160, %162, %cst_180 {dimension_numbers = #tpu.dot_dimension_numbers<[1], [0], [0], [1], [0, 0, 1, 1], [], []>} : vector<2x16xf32>, vector<16x32xf32>, vector<2x32xf32> -> vector<2x32xf32>
    %164 = arith.addf %159, %163 : vector<2x32xf32>
    %c10 = arith.constant 10 : index
    %c0_181 = arith.constant 0 : index
    %165 = vector.load %arg19[%c10, %c0_181] : memref<32x16xf32, #tpu.memory_space<vmem>>, vector<2x16xf32>
    %c5 = arith.constant 5 : index
    %c0_182 = arith.constant 0 : index
    %c0_183 = arith.constant 0 : index
    %166 = vector.load %arg9[%c5, %c0_182, %c0_183] : memref<16x16x32xf32, #tpu.memory_space<vmem>>, vector<1x16x32xf32>
    %167 = vector.shape_cast %166 : vector<1x16x32xf32> to vector<16x32xf32>
    %cst_184 = arith.constant dense<0.000000e+00> : vector<2x32xf32>
    %168 = tpu.matmul %165, %167, %cst_184 {dimension_numbers = #tpu.dot_dimension_numbers<[1], [0], [0], [1], [0, 0, 1, 1], [], []>} : vector<2x16xf32>, vector<16x32xf32>, vector<2x32xf32> -> vector<2x32xf32>
    %169 = arith.addf %164, %168 : vector<2x32xf32>
    %c12 = arith.constant 12 : index
    %c0_185 = arith.constant 0 : index
    %170 = vector.load %arg19[%c12, %c0_185] : memref<32x16xf32, #tpu.memory_space<vmem>>, vector<2x16xf32>
    %c6_186 = arith.constant 6 : index
    %c0_187 = arith.constant 0 : index
    %c0_188 = arith.constant 0 : index
    %171 = vector.load %arg9[%c6_186, %c0_187, %c0_188] : memref<16x16x32xf32, #tpu.memory_space<vmem>>, vector<1x16x32xf32>
    %172 = vector.shape_cast %171 : vector<1x16x32xf32> to vector<16x32xf32>
    %cst_189 = arith.constant dense<0.000000e+00> : vector<2x32xf32>
    %173 = tpu.matmul %170, %172, %cst_189 {dimension_numbers = #tpu.dot_dimension_numbers<[1], [0], [0], [1], [0, 0, 1, 1], [], []>} : vector<2x16xf32>, vector<16x32xf32>, vector<2x32xf32> -> vector<2x32xf32>
    %174 = arith.addf %169, %173 : vector<2x32xf32>
    %c14 = arith.constant 14 : index
    %c0_190 = arith.constant 0 : index
    %175 = vector.load %arg19[%c14, %c0_190] : memref<32x16xf32, #tpu.memory_space<vmem>>, vector<2x16xf32>
    %c7 = arith.constant 7 : index
    %c0_191 = arith.constant 0 : index
    %c0_192 = arith.constant 0 : index
    %176 = vector.load %arg9[%c7, %c0_191, %c0_192] : memref<16x16x32xf32, #tpu.memory_space<vmem>>, vector<1x16x32xf32>
    %177 = vector.shape_cast %176 : vector<1x16x32xf32> to vector<16x32xf32>
    %cst_193 = arith.constant dense<0.000000e+00> : vector<2x32xf32>
    %178 = tpu.matmul %175, %177, %cst_193 {dimension_numbers = #tpu.dot_dimension_numbers<[1], [0], [0], [1], [0, 0, 1, 1], [], []>} : vector<2x16xf32>, vector<16x32xf32>, vector<2x32xf32> -> vector<2x32xf32>
    %179 = arith.addf %174, %178 : vector<2x32xf32>
    %c16_194 = arith.constant 16 : index
    %c0_195 = arith.constant 0 : index
    %180 = vector.load %arg19[%c16_194, %c0_195] : memref<32x16xf32, #tpu.memory_space<vmem>>, vector<2x16xf32>
    %c8_196 = arith.constant 8 : index
    %c0_197 = arith.constant 0 : index
    %c0_198 = arith.constant 0 : index
    %181 = vector.load %arg9[%c8_196, %c0_197, %c0_198] : memref<16x16x32xf32, #tpu.memory_space<vmem>>, vector<1x16x32xf32>
    %182 = vector.shape_cast %181 : vector<1x16x32xf32> to vector<16x32xf32>
    %cst_199 = arith.constant dense<0.000000e+00> : vector<2x32xf32>
    %183 = tpu.matmul %180, %182, %cst_199 {dimension_numbers = #tpu.dot_dimension_numbers<[1], [0], [0], [1], [0, 0, 1, 1], [], []>} : vector<2x16xf32>, vector<16x32xf32>, vector<2x32xf32> -> vector<2x32xf32>
    %184 = arith.addf %179, %183 : vector<2x32xf32>
    %c18 = arith.constant 18 : index
    %c0_200 = arith.constant 0 : index
    %185 = vector.load %arg19[%c18, %c0_200] : memref<32x16xf32, #tpu.memory_space<vmem>>, vector<2x16xf32>
    %c9 = arith.constant 9 : index
    %c0_201 = arith.constant 0 : index
    %c0_202 = arith.constant 0 : index
    %186 = vector.load %arg9[%c9, %c0_201, %c0_202] : memref<16x16x32xf32, #tpu.memory_space<vmem>>, vector<1x16x32xf32>
    %187 = vector.shape_cast %186 : vector<1x16x32xf32> to vector<16x32xf32>
    %cst_203 = arith.constant dense<0.000000e+00> : vector<2x32xf32>
    %188 = tpu.matmul %185, %187, %cst_203 {dimension_numbers = #tpu.dot_dimension_numbers<[1], [0], [0], [1], [0, 0, 1, 1], [], []>} : vector<2x16xf32>, vector<16x32xf32>, vector<2x32xf32> -> vector<2x32xf32>
    %189 = arith.addf %184, %188 : vector<2x32xf32>
    %c20 = arith.constant 20 : index
    %c0_204 = arith.constant 0 : index
    %190 = vector.load %arg19[%c20, %c0_204] : memref<32x16xf32, #tpu.memory_space<vmem>>, vector<2x16xf32>
    %c10_205 = arith.constant 10 : index
    %c0_206 = arith.constant 0 : index
    %c0_207 = arith.constant 0 : index
    %191 = vector.load %arg9[%c10_205, %c0_206, %c0_207] : memref<16x16x32xf32, #tpu.memory_space<vmem>>, vector<1x16x32xf32>
    %192 = vector.shape_cast %191 : vector<1x16x32xf32> to vector<16x32xf32>
    %cst_208 = arith.constant dense<0.000000e+00> : vector<2x32xf32>
    %193 = tpu.matmul %190, %192, %cst_208 {dimension_numbers = #tpu.dot_dimension_numbers<[1], [0], [0], [1], [0, 0, 1, 1], [], []>} : vector<2x16xf32>, vector<16x32xf32>, vector<2x32xf32> -> vector<2x32xf32>
    %194 = arith.addf %189, %193 : vector<2x32xf32>
    %c22 = arith.constant 22 : index
    %c0_209 = arith.constant 0 : index
    %195 = vector.load %arg19[%c22, %c0_209] : memref<32x16xf32, #tpu.memory_space<vmem>>, vector<2x16xf32>
    %c11 = arith.constant 11 : index
    %c0_210 = arith.constant 0 : index
    %c0_211 = arith.constant 0 : index
    %196 = vector.load %arg9[%c11, %c0_210, %c0_211] : memref<16x16x32xf32, #tpu.memory_space<vmem>>, vector<1x16x32xf32>
    %197 = vector.shape_cast %196 : vector<1x16x32xf32> to vector<16x32xf32>
    %cst_212 = arith.constant dense<0.000000e+00> : vector<2x32xf32>
    %198 = tpu.matmul %195, %197, %cst_212 {dimension_numbers = #tpu.dot_dimension_numbers<[1], [0], [0], [1], [0, 0, 1, 1], [], []>} : vector<2x16xf32>, vector<16x32xf32>, vector<2x32xf32> -> vector<2x32xf32>
    %199 = arith.addf %194, %198 : vector<2x32xf32>
    %c24 = arith.constant 24 : index
    %c0_213 = arith.constant 0 : index
    %200 = vector.load %arg19[%c24, %c0_213] : memref<32x16xf32, #tpu.memory_space<vmem>>, vector<2x16xf32>
    %c12_214 = arith.constant 12 : index
    %c0_215 = arith.constant 0 : index
    %c0_216 = arith.constant 0 : index
    %201 = vector.load %arg9[%c12_214, %c0_215, %c0_216] : memref<16x16x32xf32, #tpu.memory_space<vmem>>, vector<1x16x32xf32>
    %202 = vector.shape_cast %201 : vector<1x16x32xf32> to vector<16x32xf32>
    %cst_217 = arith.constant dense<0.000000e+00> : vector<2x32xf32>
    %203 = tpu.matmul %200, %202, %cst_217 {dimension_numbers = #tpu.dot_dimension_numbers<[1], [0], [0], [1], [0, 0, 1, 1], [], []>} : vector<2x16xf32>, vector<16x32xf32>, vector<2x32xf32> -> vector<2x32xf32>
    %204 = arith.addf %199, %203 : vector<2x32xf32>
    %c26 = arith.constant 26 : index
    %c0_218 = arith.constant 0 : index
    %205 = vector.load %arg19[%c26, %c0_218] : memref<32x16xf32, #tpu.memory_space<vmem>>, vector<2x16xf32>
    %c13 = arith.constant 13 : index
    %c0_219 = arith.constant 0 : index
    %c0_220 = arith.constant 0 : index
    %206 = vector.load %arg9[%c13, %c0_219, %c0_220] : memref<16x16x32xf32, #tpu.memory_space<vmem>>, vector<1x16x32xf32>
    %207 = vector.shape_cast %206 : vector<1x16x32xf32> to vector<16x32xf32>
    %cst_221 = arith.constant dense<0.000000e+00> : vector<2x32xf32>
    %208 = tpu.matmul %205, %207, %cst_221 {dimension_numbers = #tpu.dot_dimension_numbers<[1], [0], [0], [1], [0, 0, 1, 1], [], []>} : vector<2x16xf32>, vector<16x32xf32>, vector<2x32xf32> -> vector<2x32xf32>
    %209 = arith.addf %204, %208 : vector<2x32xf32>
    %c28 = arith.constant 28 : index
    %c0_222 = arith.constant 0 : index
    %210 = vector.load %arg19[%c28, %c0_222] : memref<32x16xf32, #tpu.memory_space<vmem>>, vector<2x16xf32>
    %c14_223 = arith.constant 14 : index
    %c0_224 = arith.constant 0 : index
    %c0_225 = arith.constant 0 : index
    %211 = vector.load %arg9[%c14_223, %c0_224, %c0_225] : memref<16x16x32xf32, #tpu.memory_space<vmem>>, vector<1x16x32xf32>
    %212 = vector.shape_cast %211 : vector<1x16x32xf32> to vector<16x32xf32>
    %cst_226 = arith.constant dense<0.000000e+00> : vector<2x32xf32>
    %213 = tpu.matmul %210, %212, %cst_226 {dimension_numbers = #tpu.dot_dimension_numbers<[1], [0], [0], [1], [0, 0, 1, 1], [], []>} : vector<2x16xf32>, vector<16x32xf32>, vector<2x32xf32> -> vector<2x32xf32>
    %214 = arith.addf %209, %213 : vector<2x32xf32>
    %c30 = arith.constant 30 : index
    %c0_227 = arith.constant 0 : index
    %215 = vector.load %arg19[%c30, %c0_227] : memref<32x16xf32, #tpu.memory_space<vmem>>, vector<2x16xf32>
    %c15 = arith.constant 15 : index
    %c0_228 = arith.constant 0 : index
    %c0_229 = arith.constant 0 : index
    %216 = vector.load %arg9[%c15, %c0_228, %c0_229] : memref<16x16x32xf32, #tpu.memory_space<vmem>>, vector<1x16x32xf32>
    %217 = vector.shape_cast %216 : vector<1x16x32xf32> to vector<16x32xf32>
    %cst_230 = arith.constant dense<0.000000e+00> : vector<2x32xf32>
    %218 = tpu.matmul %215, %217, %cst_230 {dimension_numbers = #tpu.dot_dimension_numbers<[1], [0], [0], [1], [0, 0, 1, 1], [], []>} : vector<2x16xf32>, vector<16x32xf32>, vector<2x32xf32> -> vector<2x32xf32>
    %219 = arith.addf %214, %218 : vector<2x32xf32>
    %c0_231 = arith.constant 0 : index
    %c0_232 = arith.constant 0 : index
    %220 = vector.load %arg11[%c0_231, %c0_232] : memref<1x32xf32, #tpu.memory_space<vmem>>, vector<1x32xf32>
    %221 = vector.broadcast %220 : vector<1x32xf32> to vector<2x32xf32>
    %222 = arith.mulf %219, %221 : vector<2x32xf32>
    %c0_233 = arith.constant 0 : index
    %c0_234 = arith.constant 0 : index
    %223 = vector.load %arg12[%c0_233, %c0_234] : memref<1x32xf32, #tpu.memory_space<vmem>>, vector<1x32xf32>
    %224 = vector.broadcast %223 : vector<1x32xf32> to vector<2x32xf32>
    %225 = arith.addf %222, %224 : vector<2x32xf32>
    %cst_235 = arith.constant 0.000000e+00 : f32
    %226 = vector.broadcast %cst_235 : f32 to vector<2x32xf32>
    %227 = arith.maximumf %225, %226 : vector<2x32xf32>
    %c0_236 = arith.constant 0 : index
    %c0_237 = arith.constant 0 : index
    %228 = vector.load %arg13[%c0_236, %c0_237] : memref<32x4xf32, #tpu.memory_space<vmem>>, vector<32x4xf32>
    %cst_238 = arith.constant dense<0.000000e+00> : vector<2x4xf32>
    %229 = tpu.matmul %227, %228, %cst_238 {dimension_numbers = #tpu.dot_dimension_numbers<[1], [0], [0], [1], [0, 0, 1, 1], [], []>} : vector<2x32xf32>, vector<32x4xf32>, vector<2x4xf32> -> vector<2x4xf32>
    %c0_239 = arith.constant 0 : index
    %c0_240 = arith.constant 0 : index
    %230 = vector.load %arg14[%c0_239, %c0_240] : memref<1x4xf32, #tpu.memory_space<vmem>>, vector<1x4xf32>
    %231 = vector.broadcast %230 : vector<1x4xf32> to vector<2x4xf32>
    %232 = arith.addf %229, %231 : vector<2x4xf32>
    %c0_241 = arith.constant 0 : index
    %c0_242 = arith.constant 0 : index
    %233 = vector.load %arg15[%c0_241, %c0_242] : memref<2x4xf32, #tpu.memory_space<vmem>>, vector<2x4xf32>
    tpu.vector_store %arg15[%c0_241, %c0_242], %232 {strides = array<i32>} : memref<2x4xf32, #tpu.memory_space<vmem>>, vector<2x4xf32>,
    return
  }
}

</mosaic_0001>

<bundles_post_ra>
// kernel: jores21_forward.1
= control target key start
LH: loop header
LB: loop body
LE: loop exit
PB: predicated region body
PF: predicated region fallthrough
CT: control target
= control target key end

     0   :  { %20 = vsyncpa [#allocation7], 0  ;;  %s5476_s0 = inlined_call_operand.vmem [shape: f32[32,4], index: 0, kind: input, shape index: {}]   ;;  %s5477_s1 = inlined_call_operand.vmem [shape: f32[5,4,32], index: 1, kind: input, shape index: {}]   ;;  %s5478_s2 = inlined_call_operand.vmem [shape: f32[1,32], index: 2, kind: input, shape index: {}]   ;;  %s5479_s3 = inlined_call_operand.vmem [shape: f32[5,16,16], index: 3, kind: input, shape index: {}]   ;;  %s5480_s4 = inlined_call_operand.hbm [shape: f32[5,16,16], index: 4, kind: input, shape index: {}]   ;;  %s5481_s5 = inlined_call_operand.hbm [shape: f32[1,16], index: 5, kind: input, shape index: {}]   ;;  %s5482_s6 = inlined_call_operand.hbm [shape: f32[1,16], index: 6, kind: input, shape index: {}]   ;;  %s5483_s7 = inlined_call_operand.vmem [shape: f32[5,32,16], index: 7, kind: input, shape index: {}]   ;;  %s5484_s8 = inlined_call_operand.hbm [shape: f32[1,16], index: 8, kind: input, shape index: {}]   ;;  %s5485_s9 = inlined_call_operand.vmem [shape: f32[16,16,32], index: 9, kind: input, shape index: {}]   ;;  %s5486_s10 = inlined_call_operand.hbm [shape: f32[1,32], index: 10, kind: input, shape index: {}]   ;;  %s5487_s11 = inlined_call_operand.vmem [shape: f32[1,32], index: 11, kind: input, shape index: {}]   ;;  %s5488_s12 = inlined_call_operand.vmem [shape: f32[1,32], index: 12, kind: input, shape index: {}]   ;;  %s5489_s13 = inlined_call_operand.vmem [shape: f32[32,4], index: 13, kind: input, shape index: {}]   ;;  %s5490_s14 = inlined_call_operand.vmem [shape: f32[1,4], index: 14, kind: input, shape index: {}]   ;;  %s5491_s15 = inlined_call_operand.hbm [shape: f32[2,4], index: 15, kind: output, shape index: {}]  }
   0x1   :  { %21 = vsyncpa [#allocation10], 0 }
   0x2   :  { %22 = vsyncpa [#allocation13], 0 }
   0x3   :  { %23 = vsyncpa [#allocation8], 0  ;;  %s4811_s18 = smov [#allocation9]   ;;  %s4812_s20 = smov [#allocation12]  }
   0x4   :  { %s50_s19 = sshll.u32 %s4811_s18, 4  ;;  %s72_s21 = sshll.u32 %s4812_s20, 4  ;;  %s51_s19 = int_to_ptr.vmem [resolvable:$true] %s50_s19  ;;  %s73_s21 = int_to_ptr.vmem [resolvable:$true] %s72_s21 }
   0x5   :  { %s4671_s24 = scalar_lea.hbm %s5481_s5, 16 }
   0x6   :  { %p4672_p0 = scmp.ne.s32.totalorder %s5481_s5, %s4671_s24  ;;  %p4675_p1 = scmp.lt.u32.totalorder %s4671_s24, %s5481_s5 }
   0x8   :  { %p4677_p2 = pnand %p4675_p1, %p4672_p0 }
   0xa   :  { %4680 = shalt.err (!%p4677_p2)
}
   0xb   :  { %s4681_s29 = scalar_lea.vmem %s51_s19, 16  ;;  %s4685_s30 = scalar_lea.vmem %s51_s19, 32 }
   0xc   :  { %p4682_p3 = scmp.ne.s32.totalorder %s51_s19, %s4681_s29  ;;  %p4686_p4 = scmp.lt.s32.totalorder %s51_s19, %s51_s19 }
   0xd   :  { %p4687_p5 = scmp.lt.s32.totalorder %s4685_s30, %s4681_s29 }
   0xf   :  { %p4688_p6 = por %p4687_p5, %p4686_p4 }
  0x11   :  { %p4689_p7 = pnand %p4688_p6, %p4682_p3 }
  0x13   :  { %4692 = shalt.err (!%p4689_p7)
}
  0x14   :  { %53 = dma.hbm_to_vmem [thread:$0]  %s5481_s5, 16, %s51_s19, [#allocation10]  }
  0x15   :  { %s4693_s22 = scalar_lea.hbm %s5484_s8, 16 }
  0x16   :  { %p4694_p8 = scmp.ne.s32.totalorder %s5484_s8, %s4693_s22  ;;  %p4697_p9 = scmp.lt.u32.totalorder %s4693_s22, %s5484_s8 }
  0x18   :  { %p4699_p10 = pnand %p4697_p9, %p4694_p8 }
  0x1a   :  { %4702 = shalt.err (!%p4699_p10)
}
  0x1b   :  { %s4703_s27 = scalar_lea.vmem %s73_s21, 16  ;;  %s4707_s28 = scalar_lea.vmem %s73_s21, 32 }
  0x1c   :  { %p4704_p11 = scmp.ne.s32.totalorder %s73_s21, %s4703_s27  ;;  %p4708_p12 = scmp.lt.s32.totalorder %s73_s21, %s73_s21 }
  0x1d   :  { %p4709_p13 = scmp.lt.s32.totalorder %s4707_s28, %s4703_s27 }
  0x1f   :  { %p4710_p0 = por %p4709_p13, %p4708_p12 }
  0x21   :  { %p4711_p1 = pnand %p4710_p0, %p4704_p11 }
  0x23   :  { %4714 = shalt.err (!%p4711_p1)
}
  0x24   :  { %75 = dma.hbm_to_vmem [thread:$0]  %s5484_s8, 16, %s73_s21, [#allocation13]  }
  0x25   :  { %s4813_s29 = smov [#allocation6]   ;;  %s4715_s18 = scalar_lea.hbm %s5480_s4, 1280 }
  0x26   :  { %s37_s30 = sshll.u32 %s4813_s29, 4  ;;  %p4716_p2 = scmp.ne.s32.totalorder %s5480_s4, %s4715_s18  ;;  %s38_s30 = int_to_ptr.vmem [resolvable:$true] %s37_s30 }
  0x27   :  { %p4719_p3 = scmp.lt.u32.totalorder %s4715_s18, %s5480_s4 }
  0x29   :  { %p4721_p4 = pnand %p4719_p3, %p4716_p2 }
  0x2b   :  { %4724 = shalt.err (!%p4721_p4)
}
  0x2c   :  { %s4725_s25 = scalar_lea.vmem %s38_s30, 1280  ;;  %p4730_p6 = scmp.lt.s32.totalorder %s38_s30, %s38_s30 }
  0x2d   :  { %p4726_p5 = scmp.ne.s32.totalorder %s38_s30, %s4725_s25  ;;  %p4731_p7 = scmp.lt.s32.totalorder %s4725_s25, %s4725_s25 }
  0x2f   :  { %p4732_p8 = por %p4731_p7, %p4730_p6 }
  0x31   :  { %p4733_p9 = pnand %p4732_p8, %p4726_p5 }
  0x33   :  { %4736 = shalt.err (!%p4733_p9)
}
  0x34   :  { %s4814_s8 = smov 128   ;;  %s4815_s21 = smov 8  }
  0x35   :  { %43 = dma.hbm_to_vmem [thread:$0]  %s5480_s4, 1280, %s38_s30, [#allocation7], %s4814_s8, %s4814_s8, %s4815_s21  }
  0x36   :  { %s4816_s28 = smov [#allocation11]   ;;  %s4817_s19 = smov [#allocation14]  }
  0x37   :  { %s60_s5 = sshll.u32 %s4816_s28, 4  ;;  %s84_s29 = sshll.u32 %s4817_s19, 4  ;;  %s61_s5 = int_to_ptr.vmem [resolvable:$true] %s60_s5  ;;  %s85_s29 = int_to_ptr.vmem [resolvable:$true] %s84_s29 }
  0x38   :  { %s4737_s18 = scalar_lea.hbm %s5482_s6, 16 }
  0x39   :  { %p4738_p10 = scmp.ne.s32.totalorder %s5482_s6, %s4737_s18  ;;  %p4741_p11 = scmp.lt.u32.totalorder %s4737_s18, %s5482_s6 }
  0x3b   :  { %p4743_p12 = pnand %p4741_p11, %p4738_p10 }
  0x3d   :  { %4746 = shalt.err (!%p4743_p12)
}
  0x3e   :  { %s4747_s4 = scalar_lea.vmem %s61_s5, 16  ;;  %s4751_s30 = scalar_lea.vmem %s61_s5, 32 }
  0x3f   :  { %p4748_p13 = scmp.ne.s32.totalorder %s61_s5, %s4747_s4  ;;  %p4752_p0 = scmp.lt.s32.totalorder %s61_s5, %s61_s5 }
  0x40   :  { %p4753_p1 = scmp.lt.s32.totalorder %s4751_s30, %s4747_s4 }
  0x42   :  { %p4754_p2 = por %p4753_p1, %p4752_p0 }
  0x44   :  { %p4755_p3 = pnand %p4754_p2, %p4748_p13 }
  0x46   :  { %4758 = shalt.err (!%p4755_p3)
}
  0x47   :  { %63 = dma.hbm_to_vmem [thread:$0]  %s5482_s6, 16, %s61_s5, [#allocation10]  }
  0x48   :  { %s4759_s27 = scalar_lea.hbm %s5486_s10, 16 }
  0x49   :  { %p4760_p4 = scmp.ne.s32.totalorder %s5486_s10, %s4759_s27  ;;  %p4763_p5 = scmp.lt.u32.totalorder %s4759_s27, %s5486_s10 }
  0x4b   :  { %p4765_p6 = pnand %p4763_p5, %p4760_p4 }
  0x4d   :  { %4768 = shalt.err (!%p4765_p6)
}
  0x4e   :  { %s4769_s18 = scalar_lea.vmem %s85_s29, 16  ;;  %s4773_s20 = scalar_lea.vmem %s85_s29, 32 }
  0x4f   :  { %p4770_p7 = scmp.ne.s32.totalorder %s85_s29, %s4769_s18  ;;  %p4774_p8 = scmp.lt.s32.totalorder %s85_s29, %s85_s29 }
  0x50   :  { %p4775_p9 = scmp.lt.s32.totalorder %s4773_s20, %s4769_s18 }
  0x52   :  { %p4776_p10 = por %p4775_p9, %p4774_p8 }
  0x54   :  { %p4777_p11 = pnand %p4776_p10, %p4770_p7 }
  0x56   :  { %4780 = shalt.err (!%p4777_p11)
}
  0x57   :  { %87 = dma.hbm_to_vmem [thread:$0]  %s5486_s10, 16, %s85_s29, [#allocation13]  }
  0x58   :  { %4803 = dma.done.wait [#allocation7], 1280  }
  0x59   :  { %4804 = vsyncadd [#allocation7], 4294966016 }
  0x5a   :  { %4805 = dma.done.wait [#allocation10], 32  }
  0x5b   :  { %4806 = vsyncadd [#allocation10], 4294967264 }
  0x5c   :  { %4807 = dma.done.wait [#allocation13], 32  }
  0x5d   :  { %4808 = vsyncadd [#allocation13], 4294967264  ;;  %vm111_vm0 = vcmask 31744   ;;  %v4818_v0 = vmov 0.0   ;;  %vm148_vm1 = vcmask 1043456   ;;  %v117_v2 = vld [vmem:[%s5476_s0] sm:$0xff] }
  0x5e   :  { %112 = vst.msk [vmem:[#allocation2] sm:$0xff] %vm111_vm0, %v4818_v0  ;;  %113 = vst.msk [vmem:[#allocation2 + $0x8] sm:$0xff] %vm111_vm0, %v4818_v0  ;;  %v3750_v1 = vld [vmem:[%s5477_s1 + $0x4] sm:$0xf]  ;;  %v129_v3 = vld [vmem:[%s5477_s1] sm:$0xf] }
  0x5f   :  { %114 = vst.msk [vmem:[#allocation2 + $0x10] sm:$0xff] %vm111_vm0, %v4818_v0  ;;  %115 = vst.msk [vmem:[#allocation2 + $0x18] sm:$0xff] %vm111_vm0, %v4818_v0  ;;  %4096 = vmatprep.subr.msk.mxu1 %vm148_vm1, %v3750_v1  ;;  %v118_v4 = vld [vmem:[%s5476_s0 + $0x8] sm:$0xff]  ;;  %v119_v5 = vld [vmem:[%s5476_s0 + $0x10] sm:$0xff]  ;;  %vm682_vm2 = vcmask 261120   ;;  %vm707_vm3 = vcmask 130048  }
  0x60   :  { %116 = vst.msk [vmem:[#allocation2 + $0x20] sm:$0xff] %vm111_vm0, %v4818_v0  ;;  %121 = vst.msk [vmem:[#allocation2 + $0x4] sm:$0xff] %vm111_vm0, %v117_v2  ;;  %v120_v6 = vld [vmem:[%s5476_s0 + $0x18] sm:$0xff]  ;;  %4097 = vmatpush3.msk.msra.mxu1 %vm148_vm1, %v3750_v1  ;;  %v3773_v7 = vld [vmem:[%s5477_s1 + $0x10] sm:$0xf]  ;;  %s4820_s30 = smov 16  }
  0x61   :  { %122 = vst.msk [vmem:[#allocation2 + $0xc] sm:$0xff] %vm111_vm0, %v118_v4  ;;  %123 = vst.msk [vmem:[#allocation2 + $0x14] sm:$0xff] %vm111_vm0, %v119_v5  ;;  %4104 = vmatprep.subr.msk.mxu1 %vm148_vm1, %v129_v3  ;;  %4128 = vmatprep.subr.msk.mxu0 %vm148_vm1, %v3773_v7  ;;  %v3761_v11 = vld [vmem:[%s5477_s1 + $0x8] sm:$0xf]  ;;  %v3767_v18 = vld [vmem:[%s5477_s1 + $0xc] sm:$0xf] }
  0x62   :  { %124 = vst.msk [vmem:[#allocation2 + $0x1c] sm:$0xff] %vm111_vm0, %v120_v6  ;;  %4129 = vmatpush3.msk.msra.mxu0 %vm148_vm1, %v3773_v7  ;;  %v3780_v27 = vld [vmem:[%s5479_s3 + $0x10] sm:$0xff]  ;;  %v3781_v28 = vld [vmem:[%s5479_s3 + $0x18] sm:$0xff]  ;;  %v696_v30 = vld [vmem:[%s5479_s3] sm:$0xff]  ;;  %vm1810_vm4 = vcmask 261248   ;;  %vm4822_vm5 = vmmov 0  }
  0x63   :  { %684 = vst.msk [vmem:[#allocation3 + $0x8] sm:$0xff] %vm682_vm2, %v4818_v0  ;;  %685 = vst.msk [vmem:[#allocation3 + $0x10] sm:$0xff] %vm682_vm2, %v4818_v0  ;;  %v4429_v29 = vpack.c.bf16 %v3781_v28, %v3780_v27  ;;  %v697_v31 = vld [vmem:[%s5479_s3 + $0x8] sm:$0xff]  ;;  %v3779_v38 = vld [vmem:[%s5478_s2] ss:$0 sm:$0xff]  ;;  %s4819_s2 = smov 112  }
  0x64   :  { %683 = vst.msk [vmem:[#allocation3] sm:$0xff] %vm682_vm2, %v4818_v0  ;;  %686 = vst.msk [vmem:[#allocation3 + $0x18] sm:$0xff] %vm682_vm2, %v4818_v0  ;;  %v4433_v32 = vpack.c.bf16 %v697_v31, %v696_v30  ;;  %v903_v54 = vld [vmem:[#allocation6 + $0x10] sm:$0xff]  ;;  %v904_v55 = vld [vmem:[#allocation6 + $0x18] sm:$0xff]  ;;  %s4823_s27 = smov [#allocation15]   ;;  %vm3731_vm6 = vcmask 25600  }
  0x65   :  { %687 = vst.msk [vmem:[#allocation3 + $0x20] sm:$0xff] %vm682_vm2, %v4818_v0  ;;  %1755 = vst.msk [vmem:[#allocation4] sm:$0xff] %vm682_vm2, %v4818_v0  ;;  %v4437_v58 = vpack.c.bf16 %v904_v55, %v903_v54  ;;  %v698_v62 = vld [vmem:[#allocation6] sm:$0xff]  ;;  %v699_v63 = vld [vmem:[#allocation6 + $0x8] sm:$0xff]  ;;  %s3739_s28 = sshll.u32 %s4823_s27, 4  ;;  %s3740_s28 = int_to_ptr.vmem [resolvable:$true] %s3739_s28 }
  0x66   :  { %1756 = vst.msk [vmem:[#allocation4 + $0x8] sm:$0xff] %vm682_vm2, %v4818_v0  ;;  %1757 = vst.msk [vmem:[#allocation4 + $0x10] sm:$0xff] %vm682_vm2, %v4818_v0  ;;  %v4441_v2 = vpack.c.bf16 %v699_v63, %v698_v62  ;;  %v3808_v28 = vld [vmem:[%s5479_s3 + $0x30] sm:$0xff]  ;;  %p4786_p13 = scmp.lt.s32.totalorder %s3740_s28, %s3740_s28 }
  0x67   :  { %v130_v8 = vld [vmem:[#allocation2 + $0x2] sm:$0xff]  ;;  %1758 = vst.msk [vmem:[#allocation4 + $0x18] sm:$0xff] %vm682_vm2, %v4818_v0  ;;  %1759 = vst.msk [vmem:[#allocation4 + $0x20] sm:$0xff] %vm682_vm2, %v4818_v0 }
  0x68   :  { %4098 = vmatprep.mubr.msk.f32.mxu1 %vm111_vm0, %v130_v8  ;;  %v131_v9 = vld [vmem:[#allocation2 + $0xa] sm:$0xff]  ;;  %v132_v10 = vld [vmem:[#allocation2 + $0x12] sm:$0xff]  ;;  %v125_v14 = vld [vmem:[#allocation2] sm:$0xff] }
  0x69   :  { %4099 = vmatmul.mubr.msk.f32.vlgmr.msra.gmra.mrb[0].mxu1 %vm111_vm0, %v131_v9  ;;  %v133_v12 = vld [vmem:[#allocation2 + $0x1a] sm:$0xff]  ;;  %v126_v13 = vld [vmem:[#allocation2 + $0x8] sm:$0xff]  ;;  %v127_v15 = vld [vmem:[#allocation2 + $0x10] sm:$0xff] }
  0x6a   :  { %4105 = vmatpush3.msk.msra.mxu1 %vm148_vm1, %v129_v3  ;;  %4101 = vmatprep.mubr.msk.f32.mxu1 %vm111_vm0, %v132_v10  ;;  %v128_v16 = vld [vmem:[#allocation2 + $0x18] sm:$0xff]  ;;  %v560_v17 = vld [vmem:[#allocation2 + $0x20] sm:$0xff]  ;;  %v338_v20 = vld [vmem:[#allocation2 + $0xc] sm:$0xff] }
  0x6b   :  { %4112 = vmatprep.subr.msk.mxu1 %vm148_vm1, %v3761_v11  ;;  %4130 = vmatprep.mubr.msk.f32.mxu0 %vm111_vm0, %v126_v13  ;;  %v337_v19 = vld [vmem:[#allocation2 + $0x4] sm:$0xff]  ;;  %v339_v21 = vld [vmem:[#allocation2 + $0x14] sm:$0xff]  ;;  %v340_v22 = vld [vmem:[#allocation2 + $0x1c] sm:$0xff] }
  0x6c   :  { %4131 = vmatmul.mubr.msk.f32.vlgmr.msra.gmra.mrb[0].mxu0 %vm111_vm0, %v127_v15  ;;  %v447_v23 = vld [vmem:[#allocation2 + $0x6] sm:$0xff]  ;;  %v448_v24 = vld [vmem:[#allocation2 + $0xe] sm:$0xff]  ;;  %v449_v25 = vld [vmem:[#allocation2 + $0x16] sm:$0xff] }
  0x6d   :  { %4102 = vmatmul.mubr.msk.f32.gmra.mrb[2].mxu1 %vm111_vm0, %v133_v12  ;;  %4133 = vmatprep.mubr.msk.f32.mxu0 %vm111_vm0, %v128_v16  ;;  %v450_v26 = vld [vmem:[#allocation2 + $0x1e] sm:$0xff] }
  0x6e   :  { %4106 = vmatprep.mubr.msk.f32.mxu1 %vm111_vm0, %v125_v14 }
  0x70   :  { %4134 = vmatmul.mubr.msk.f32.gmra.mrb[2].mxu0 %vm111_vm0, %v560_v17 }
  0x71   :  { %4107 = vmatmul.mubr.msk.f32.vlgmr.msra.gmra.mrb[0].mxu1 %vm111_vm0, %v126_v13 }
  0x72   :  { %4113 = vmatpush3.msk.msra.mxu1 %vm148_vm1, %v3761_v11  ;;  %4109 = vmatprep.mubr.msk.f32.mxu1 %vm111_vm0, %v127_v15  ;;  %v3798_v15 = vld [vmem:[%s5479_s3 + $0x20] sm:$0xff] }
  0x73   :  { %4120 = vmatprep.subr.msk.mxu1 %vm148_vm1, %v3767_v18 }
  0x75   :  { %4110 = vmatmul.mubr.msk.f32.gmra.mrb[2].mxu1 %vm111_vm0, %v128_v16  ;;  %v3799_v16 = vld [vmem:[%s5479_s3 + $0x28] sm:$0xff] }
  0x76   :  { %4114 = vmatprep.mubr.msk.f32.mxu1 %vm111_vm0, %v337_v19  ;;  %v4445_v17 = vpack.c.bf16 %v3799_v16, %v3798_v15 }
  0x79   :  { %4115 = vmatmul.mubr.msk.f32.vlgmr.msra.gmra.mrb[0].mxu1 %vm111_vm0, %v338_v20 }
  0x7a   :  { %4121 = vmatpush3.msk.msra.mxu1 %vm148_vm1, %v3767_v18  ;;  %4117 = vmatprep.mubr.msk.f32.mxu1 %vm111_vm0, %v339_v21 }
  0x7b   :  { %4430 = vmatprep.subr.bf16.mxu1 %v4429_v29 }
  0x7d   :  { %4118 = vmatmul.mubr.msk.f32.gmra.mrb[2].mxu1 %vm111_vm0, %v340_v22  ;;  %v1216_v22 = vld [vmem:[#allocation6 + $0x20] sm:$0xff] }
  0x7e   :  { %4122 = vmatprep.mubr.msk.f32.mxu1 %vm111_vm0, %v447_v23  ;;  %v1217_v23 = vld [vmem:[#allocation6 + $0x28] sm:$0xff] }
  0x81   :  { %4123 = vmatmul.mubr.msk.f32.vlgmr.msra.gmra.mrb[0].mxu1 %vm111_vm0, %v448_v24  ;;  %v4449_v24 = vpack.c.bf16 %v1217_v23, %v1216_v22 }
  0x82   :  { %4125 = vmatprep.mubr.msk.f32.mxu1 %vm111_vm0, %v449_v25  ;;  %4432 = vmatpush3.bf16.msra.mxu1 %v4429_v29  ;;  %v3809_v29 = vld [vmem:[%s5479_s3 + $0x38] sm:$0xff] }
  0x83   :  { %4434 = vmatprep.subr.bf16.mxu1 %v4433_v32  ;;  %v4453_v30 = vpack.c.bf16 %v3809_v29, %v3808_v28  ;;  %v1821_v28 = vld [vmem:[%s5483_s7 + $0x10] sm:$0xff]  ;;  %v1822_v29 = vld [vmem:[%s5483_s7 + $0x18] sm:$0xff] }
  0x85   :  { %4126 = vmatmul.mubr.msk.f32.gmra.mrb[2].mxu1 %vm111_vm0, %v450_v26 }
 0x13f   :  { %v4132_v33 = vpop.f32.mrb[0].mxu0 }
 0x140   :  { %v644_v34 = vpop.f32.mrb[1].mxu0 }
 0x143   :  { %v4135_v35 = vpop.f32.mrb[2].mxu0 }
 0x144   :  { %v654_v36 = vpop.f32.mrb[3].mxu0 }
 0x154   :  { %v4124_v37 = vpop.f32.mrb[0].mxu1 }
 0x155   :  { %v4563_v39 = vadd.f32 %v4132_v33, %v4124_v37  ;;  %v534_v40 = vpop.f32.mrb[1].mxu1  ;;  %v1433_v33 = vld [vmem:[#allocation6 + $0x38] sm:$0xff] }
 0x156   :  { %v4564_v41 = vadd.f32 %v644_v34, %v534_v40 }
 0x157   :  { %v675_v42 = vadd.f32 %v4563_v39, %v3779_v38  ;;  %v3819_v39 = vld [vmem:[%s5479_s3 + $0x48] sm:$0xff] }
 0x158   :  { %v674_v43 = vadd.f32 %v4564_v41, %v3779_v38  ;;  %v4127_v44 = vpop.f32.mrb[2].mxu1 }
 0x159   :  { %v679_v45 = vmax.f32 %v675_v42, 0.0  ;;  %v4565_v46 = vadd.f32 %v4135_v35, %v4127_v44  ;;  %v544_v47 = vpop.f32.mrb[3].mxu1  ;;  %v1648_v42 = vld [vmem:[#allocation6 + $0x40] sm:$0xff] }
 0x15a   :  { %v678_v48 = vmax.f32 %v674_v43, 0.0  ;;  %v4566_v49 = vadd.f32 %v654_v36, %v544_v47  ;;  %v1649_v43 = vld [vmem:[#allocation6 + $0x48] sm:$0xff] }
 0x15b   :  { %689 = vst.msk [vmem:[#allocation3 + $0xc] sm:$0xff] %vm682_vm2, %v679_v45  ;;  %v677_v50 = vadd.f32 %v4565_v46, %v3779_v38  ;;  %v4465_v45 = vpack.c.bf16 %v1649_v43, %v1648_v42  ;;  %v3850_v43 = vld [vmem:[%s5483_s7 + $0x60] sm:$0xff] }
 0x15c   :  { %688 = vst.msk [vmem:[#allocation3 + $0x4] sm:$0xff] %vm682_vm2, %v678_v48  ;;  %v676_v51 = vadd.f32 %v4566_v49, %v3779_v38  ;;  %v3818_v38 = vld [vmem:[%s5479_s3 + $0x40] sm:$0xff] }
 0x15d   :  { %v681_v52 = vmax.f32 %v677_v50, 0.0  ;;  %v4461_v40 = vpack.c.bf16 %v3819_v39, %v3818_v38  ;;  %v3844_v38 = vld [vmem:[%s5483_s7 + $0x50] sm:$0xff]  ;;  %v3845_v39 = vld [vmem:[%s5483_s7 + $0x58] sm:$0xff] }
 0x15e   :  { %v680_v53 = vmax.f32 %v676_v51, 0.0 }
 0x15f   :  { %691 = vst.msk [vmem:[#allocation3 + $0x1c] sm:$0xff] %vm682_vm2, %v681_v52  ;;  %v3828_v52 = vld [vmem:[#allocation9] ss:$0 sm:$0xff] }
 0x160   :  { %690 = vst.msk [vmem:[#allocation3 + $0x14] sm:$0xff] %vm682_vm2, %v680_v53 }
 0x162   :  { %v1108_v6 = vld [vmem:[#allocation3 + $0xc] sm:$0xff] }
 0x163   :  { %v700_v56 = vld [vmem:[#allocation3 + $0x2] sm:$0xff]  ;;  %v701_v57 = vld [vmem:[#allocation3 + $0xa] sm:$0xff] }
 0x164   :  { %905 = vrot.lane.b32.xlu0 %v700_v56, %s4819_s2  ;;  %4140 = vmatprep.mubr.msk.f32.mxu1 %vm707_vm3, %v700_v56  ;;  %v692_v61 = vld [vmem:[#allocation3] sm:$0xff]  ;;  %v5084_v1 = vld [vmem:[#allocation3 + $0x8] sm:$0xff]  ;;  %v3830_v56 = vld [vmem:[%s5483_s7 + $0x20] sm:$0xff] }
 0x165   :  { %4141 = vmatmul.mubr.msk.f32.vlgmr.msra.gmra.mrb[4].mxu1 %vm707_vm3, %v701_v57  ;;  %v1107_v5 = vld [vmem:[#allocation3 + $0x4] sm:$0xff] }
 0x166   :  { %4436 = vmatpush3.bf16.msra.mxu1 %v4433_v32  ;;  %v1110_v8 = vld [vmem:[#allocation3 + $0x1c] sm:$0xff]  ;;  %v5105_v9 = vld [vmem:[#allocation3 + $0x6] sm:$0xff] }
 0x167   :  { %v702_v59 = vld [vmem:[#allocation3 + $0x12] sm:$0xff]  ;;  %v703_v60 = vld [vmem:[#allocation3 + $0x1a] sm:$0xff]  ;;  %4438 = vmatprep.subr.bf16.mxu1 %v4437_v58 }
 0x168   :  { %907 = vrot.lane.b32.xlu0 %v701_v57, %s4819_s2  ;;  %909 = vrot.lane.b32.xlu1 %v702_v59, %s4819_s2  ;;  %v5088_v3 = vld [vmem:[#allocation3 + $0x10] sm:$0xff]  ;;  %v5096_v4 = vld [vmem:[#allocation3 + $0x18] sm:$0xff]  ;;  %v5128_v13 = vld [vmem:[#allocation3 + $0x20] sm:$0xff] }
 0x169   :  { %4143 = vmatprep.mubr.msk.f32.mxu1 %vm707_vm3, %v702_v59  ;;  %v1109_v7 = vld [vmem:[#allocation3 + $0x14] sm:$0xff]  ;;  %v5118_v12 = vld [vmem:[#allocation3 + $0x1e] sm:$0xff] }
 0x16a   :  { %4144 = vmatmul.mubr.msk.f32.gmra.mrb[6].mxu1 %vm707_vm3, %v703_v60  ;;  %v5110_v10 = vld [vmem:[#allocation3 + $0xe] sm:$0xff]  ;;  %v5112_v11 = vld [vmem:[#allocation3 + $0x16] sm:$0xff]  ;;  %v1432_v32 = vld [vmem:[#allocation6 + $0x30] sm:$0xff] }
 0x16b   :  { %4150 = vmatprep.mubr.msk.f32.mxu1 %vm707_vm3, %v692_v61  ;;  %v4457_v35 = vpack.c.bf16 %v1433_v33, %v1432_v32  ;;  %v3831_v57 = vld [vmem:[%s5483_s7 + $0x28] sm:$0xff]  ;;  %v4481_v32 = vpack.c.bf16 %v1822_v29, %v1821_v28  ;;  %v3842_v33 = vld [vmem:[%s5483_s7 + $0x40] sm:$0xff]  ;;  %v3875_v28 = vld [vmem:[%s5485_s9 + $0x30] sm:$0xff] }
 0x16c   :  { %1006 = vrot.lane.b32.xlu0 %v692_v61, %s4819_s2  ;;  %911 = vrot.lane.b32.xlu1 %v703_v60, %s4819_s2  ;;  %v4469_v59 = vpack.c.bf16 %v3831_v57, %v3830_v56  ;;  %v3876_v29 = vld [vmem:[%s5485_s9 + $0x38] sm:$0xff] }
 0x16e   :  { %4151 = vmatmul.mubr.msk.f32.vlgmr.msra.gmra.mrb[4].mxu1 %vm707_vm3, %v5084_v1  ;;  %4470 = vmatprep.subr.bf16.mxu0 %v4469_v59 }
 0x16f   :  { %4153 = vmatprep.mubr.msk.f32.mxu1 %vm707_vm3, %v5088_v3  ;;  %4440 = vmatpush3.bf16.msra.mxu1 %v4437_v58 }
 0x170   :  { %1008 = vrot.lane.b32.xlu1 %v5084_v1, %s4819_s2  ;;  %1010 = vrot.lane.b32.xlu0 %v5088_v3, %s4819_s2 }
 0x171   :  { %4442 = vmatprep.subr.bf16.mxu1 %v4441_v2  ;;  %4472 = vmatpush3.bf16.msra.mxu0 %v4469_v59  ;;  %v3861_v59 = vld [vmem:[%s5483_s7 + $0x98] sm:$0xff] }
 0x172   :  { %4154 = vmatmul.mubr.msk.f32.gmra.mrb[6].mxu1 %vm707_vm3, %v5096_v4 }
 0x174   :  { %1012 = vrot.lane.b32.xlu1 %v5096_v4, %s4819_s2  ;;  %1218 = vrot.lane.b32.xlu0 %v1107_v5, %s4819_s2 }
 0x178   :  { %1220 = vrot.lane.b32.xlu1 %v1108_v6, %s4819_s2  ;;  %1222 = vrot.lane.b32.xlu0 %v1109_v7, %s4819_s2 }
 0x17c   :  { %1224 = vrot.lane.b32.xlu1 %v1110_v8, %s4819_s2  ;;  %1434 = vrot.lane.b32.xlu0 %v5105_v9, %s4819_s2 }
 0x180   :  { %1436 = vrot.lane.b32.xlu1 %v5110_v10, %s4819_s2  ;;  %1438 = vrot.lane.b32.xlu0 %v5112_v11, %s4819_s2 }
 0x184   :  { %1440 = vrot.lane.b32.xlu1 %v5118_v12, %s4819_s2  ;;  %1650 = vrot.lane.b32.xlu0 %v5084_v1, %s4819_s2 }
 0x188   :  { %1652 = vrot.lane.b32.xlu1 %v5088_v3, %s4819_s2  ;;  %1654 = vrot.lane.b32.xlu0 %v5096_v4, %s4819_s2 }
 0x18c   :  { %1656 = vrot.lane.b32.xlu1 %v5128_v13, %s4819_s2 }
 0x1d6   :  { %v906_v14 = vpop.permute.xlu0 %905 }
 0x1d7   :  { %4160 = vmatprep.mubr.msk.f32.mxu1 %vm707_vm3, %v906_v14 }
 0x1da   :  { %v908_v18 = vpop.permute.xlu0 %907  ;;  %v910_v19 = vpop.permute.xlu1 %909 }
 0x1db   :  { %4161 = vmatmul.mubr.msk.f32.vlgmr.msra.gmra.mrb[8].mxu1 %vm707_vm3, %v908_v18 }
 0x1dc   :  { %4444 = vmatpush3.bf16.msra.mxu1 %v4441_v2  ;;  %4163 = vmatprep.mubr.msk.f32.mxu1 %vm707_vm3, %v910_v19  ;;  %v3832_v2 = vld [vmem:[%s5483_s7 + $0x30] sm:$0xff] }
 0x1dd   :  { %4446 = vmatprep.subr.bf16.mxu1 %v4445_v17 }
 0x1de   :  { %v1007_v20 = vpop.permute.xlu0 %1006  ;;  %v912_v21 = vpop.permute.xlu1 %911 }
 0x1df   :  { %4164 = vmatmul.mubr.msk.f32.gmra.mrb[10].mxu1 %vm707_vm3, %v912_v21 }
 0x1e0   :  { %4170 = vmatprep.mubr.msk.f32.mxu1 %vm707_vm3, %v1007_v20 }
 0x1e2   :  { %v1009_v25 = vpop.permute.xlu1 %1008  ;;  %v1011_v26 = vpop.permute.xlu0 %1010 }
 0x1e3   :  { %4171 = vmatmul.mubr.msk.f32.vlgmr.msra.gmra.mrb[8].mxu1 %vm707_vm3, %v1009_v25 }
 0x1e4   :  { %4448 = vmatpush3.bf16.msra.mxu1 %v4445_v17  ;;  %4173 = vmatprep.mubr.msk.f32.mxu1 %vm707_vm3, %v1011_v26 }
 0x1e5   :  { %4450 = vmatprep.subr.bf16.mxu1 %v4449_v24 }
 0x1e6   :  { %v1013_v27 = vpop.permute.xlu1 %1012  ;;  %v1219_v31 = vpop.permute.xlu0 %1218 }
 0x1e7   :  { %4174 = vmatmul.mubr.msk.f32.gmra.mrb[10].mxu1 %vm707_vm3, %v1013_v27 }
 0x1e8   :  { %4180 = vmatprep.mubr.msk.f32.mxu1 %vm707_vm3, %v1107_v5  ;;  %v3829_v5 = vld [vmem:[#allocation11] ss:$0 sm:$0xff] }
 0x1ea   :  { %v1221_v34 = vpop.permute.xlu1 %1220  ;;  %v1223_v36 = vpop.permute.xlu0 %1222 }
 0x1eb   :  { %4181 = vmatmul.mubr.msk.f32.vlgmr.msra.gmra.mrb[4].mxu1 %vm707_vm3, %v1108_v6 }
 0x1ec   :  { %4452 = vmatpush3.bf16.msra.mxu1 %v4449_v24  ;;  %4183 = vmatprep.mubr.msk.f32.mxu1 %vm707_vm3, %v1109_v7 }
 0x1ed   :  { %4454 = vmatprep.subr.bf16.mxu1 %v4453_v30 }
 0x1ee   :  { %v1225_v37 = vpop.permute.xlu1 %1224  ;;  %v1435_v41 = vpop.permute.xlu0 %1434 }
 0x1ef   :  { %4184 = vmatmul.mubr.msk.f32.gmra.mrb[6].mxu1 %vm707_vm3, %v1110_v8 }
 0x1f0   :  { %4190 = vmatprep.mubr.msk.f32.mxu1 %vm707_vm3, %v1219_v31 }
 0x1f2   :  { %v1437_v44 = vpop.permute.xlu1 %1436  ;;  %v1439_v46 = vpop.permute.xlu0 %1438 }
 0x1f3   :  { %4191 = vmatmul.mubr.msk.f32.vlgmr.msra.gmra.mrb[8].mxu1 %vm707_vm3, %v1221_v34  ;;  %v3843_v34 = vld [vmem:[%s5483_s7 + $0x48] sm:$0xff] }
 0x1f4   :  { %4456 = vmatpush3.bf16.msra.mxu1 %v4453_v30  ;;  %4193 = vmatprep.mubr.msk.f32.mxu1 %vm707_vm3, %v1223_v36 }
 0x1f5   :  { %4458 = vmatprep.subr.bf16.mxu1 %v4457_v35 }
 0x1f6   :  { %v1441_v47 = vpop.permute.xlu1 %1440  ;;  %v1651_v48 = vpop.permute.xlu0 %1650 }
 0x1f7   :  { %4194 = vmatmul.mubr.msk.f32.gmra.mrb[10].mxu1 %vm707_vm3, %v1225_v37  ;;  %v4485_v37 = vpack.c.bf16 %v3843_v34, %v3842_v33  ;;  %v3879_v33 = vld [vmem:[%s5485_s9 + $0x48] sm:$0xff] }
 0x1f8   :  { %4200 = vmatprep.mubr.msk.f32.mxu1 %vm707_vm3, %v5105_v9 }
 0x1fa   :  { %v1653_v49 = vpop.permute.xlu1 %1652  ;;  %v1655_v50 = vpop.permute.xlu0 %1654 }
 0x1fb   :  { %4201 = vmatmul.mubr.msk.f32.vlgmr.msra.gmra.mrb[4].mxu1 %vm707_vm3, %v5110_v10 }
 0x1fc   :  { %4460 = vmatpush3.bf16.msra.mxu1 %v4457_v35  ;;  %4203 = vmatprep.mubr.msk.f32.mxu1 %vm707_vm3, %v5112_v11 }
 0x1fd   :  { %4462 = vmatprep.subr.bf16.mxu1 %v4461_v40 }
 0x1fe   :  { %v1657_v51 = vpop.permute.xlu1 %1656 }
 0x1ff   :  { %4204 = vmatmul.mubr.msk.f32.gmra.mrb[6].mxu1 %vm707_vm3, %v5118_v12  ;;  %v1819_v12 = vld [vmem:[%s5483_s7] sm:$0xff] }
 0x200   :  { %4210 = vmatprep.mubr.msk.f32.mxu1 %vm707_vm3, %v1435_v41  ;;  %v4489_v41 = vpack.c.bf16 %v3845_v39, %v3844_v38 }
 0x203   :  { %4211 = vmatmul.mubr.msk.f32.vlgmr.msra.gmra.mrb[8].mxu1 %vm707_vm3, %v1437_v44  ;;  %v3851_v44 = vld [vmem:[%s5483_s7 + $0x68] sm:$0xff] }
 0x204   :  { %4464 = vmatpush3.bf16.msra.mxu1 %v4461_v40  ;;  %4213 = vmatprep.mubr.msk.f32.mxu1 %vm707_vm3, %v1439_v46  ;;  %v4493_v46 = vpack.c.bf16 %v3851_v44, %v3850_v43  ;;  %v3887_v44 = vld [vmem:[%s5485_s9 + $0x70] sm:$0xff] }
 0x205   :  { %4466 = vmatprep.subr.bf16.mxu1 %v4465_v45 }
 0x207   :  { %4214 = vmatmul.mubr.msk.f32.gmra.mrb[10].mxu1 %vm707_vm3, %v1441_v47 }
 0x208   :  { %4220 = vmatprep.mubr.msk.f32.mxu1 %vm707_vm3, %v5084_v1 }
 0x20b   :  { %4221 = vmatmul.mubr.msk.f32.vlgmr.msra.gmra.mrb[4].mxu1 %vm707_vm3, %v5088_v3  ;;  %v3833_v3 = vld [vmem:[%s5483_s7 + $0x38] sm:$0xff] }
 0x20c   :  { %4468 = vmatpush3.bf16.msra.mxu1 %v4465_v45  ;;  %4223 = vmatprep.mubr.msk.f32.mxu1 %vm707_vm3, %v5096_v4  ;;  %v4473_v6 = vpack.c.bf16 %v3833_v3, %v3832_v2  ;;  %v2384_v3 = vld [vmem:[%s5485_s9] sm:$0xff] }
 0x20e   :  { %4474 = vmatprep.subr.bf16.mxu0 %v4473_v6 }
 0x20f   :  { %4224 = vmatmul.mubr.msk.f32.gmra.mrb[6].mxu1 %vm707_vm3, %v5128_v13  ;;  %4476 = vmatpush3.bf16.msra.mxu0 %v4473_v6  ;;  %v1820_v13 = vld [vmem:[%s5483_s7 + $0x8] sm:$0xff] }
 0x210   :  { %4230 = vmatprep.mubr.msk.f32.mxu1 %vm707_vm3, %v1651_v48  ;;  %v4477_v15 = vpack.c.bf16 %v1820_v13, %v1819_v12  ;;  %v3852_v48 = vld [vmem:[%s5483_s7 + $0x70] sm:$0xff] }
 0x212   :  { %4478 = vmatprep.subr.bf16.mxu0 %v4477_v15 }
 0x213   :  { %4231 = vmatmul.mubr.msk.f32.vlgmr.msra.gmra.mrb[8].mxu1 %vm707_vm3, %v1653_v49  ;;  %v3853_v49 = vld [vmem:[%s5483_s7 + $0x78] sm:$0xff] }
 0x214   :  { %4233 = vmatprep.mubr.msk.f32.mxu1 %vm707_vm3, %v1655_v50 }
 0x217   :  { %4234 = vmatmul.mubr.msk.f32.gmra.mrb[10].mxu1 %vm707_vm3, %v1657_v51  ;;  %v4497_v51 = vpack.c.bf16 %v3853_v49, %v3852_v48  ;;  %v3890_v48 = vld [vmem:[%s5485_s9 + $0x80] sm:$0xff]  ;;  %v3891_v49 = vld [vmem:[%s5485_s9 + $0x88] sm:$0xff] }
 0x218   :  { %4426 = vmatprep.mubr.msk.f32.mxu1 %vm4822_vm5, %v4818_v0 }
 0x2de   :  { %v4222_v53 = vpop.f32.mrb[4].mxu1 }
 0x2df   :  { %v1768_v54 = vadd.f32 %v4222_v53, %v3828_v52  ;;  %v1624_v55 = vpop.f32.mrb[5].mxu1  ;;  %v3858_v53 = vld [vmem:[%s5483_s7 + $0x80] sm:$0xff] }
 0x2e0   :  { %v1767_v58 = vadd.f32 %v3828_v52, %v1624_v55 }
 0x2e1   :  { %v1772_v60 = vmax.f32 %v1768_v54, 0.0  ;;  %v3859_v54 = vld [vmem:[%s5483_s7 + $0x88] sm:$0xff] }
 0x2e2   :  { %v1771_v61 = vmax.f32 %v1767_v58, 0.0  ;;  %v4225_v62 = vpop.f32.mrb[6].mxu1  ;;  %v4501_v56 = vpack.c.bf16 %v3859_v54, %v3858_v53  ;;  %v3860_v58 = vld [vmem:[%s5483_s7 + $0x90] sm:$0xff]  ;;  %v3894_v53 = vld [vmem:[%s5485_s9 + $0x98] sm:$0xff] }
 0x2e3   :  { %1776 = vst.msk [vmem:[#allocation4 + $0xc] sm:$0xff] %vm707_vm3, %v1772_v60  ;;  %v1770_v63 = vadd.f32 %v4225_v62, %v3828_v52  ;;  %v1634_v1 = vpop.f32.mrb[7].mxu1 }
 0x2e4   :  { %1775 = vst.msk [vmem:[#allocation4 + $0x4] sm:$0xff] %vm707_vm3, %v1771_v61  ;;  %v1769_v4 = vadd.f32 %v3828_v52, %v1634_v1  ;;  %v4505_v61 = vpack.c.bf16 %v3861_v59, %v3860_v58 }
 0x2e5   :  { %v1774_v7 = vmax.f32 %v1770_v63, 0.0 }
 0x2e6   :  { %v1773_v8 = vmax.f32 %v1769_v4, 0.0  ;;  %v4232_v9 = vpop.f32.mrb[8].mxu1  ;;  %v2385_v4 = vld [vmem:[%s5485_s9 + $0x8] sm:$0xff] }
 0x2e7   :  { %1778 = vst.msk [vmem:[#allocation4 + $0x1c] sm:$0xff] %vm707_vm3, %v1774_v7  ;;  %v1787_v10 = vadd.f32 %v4232_v9, %v3829_v5  ;;  %v1732_v11 = vpop.f32.mrb[9].mxu1  ;;  %v4510_v6 = vpack.c.bf16 %v2385_v4, %v2384_v3  ;;  %v3866_v7 = vld [vmem:[#allocation12] ss:$0 sm:$0xff] }
 0x2e8   :  { %1777 = vst.msk [vmem:[#allocation4 + $0x14] sm:$0xff] %vm707_vm3, %v1773_v8  ;;  %v1786_v14 = vadd.f32 %v3829_v5, %v1732_v11 }
 0x2e9   :  { %v1791_v16 = vmax.f32 %v1787_v10, 0.0 }
 0x2ea   :  { %v1790_v17 = vmax.f32 %v1786_v14, 0.0  ;;  %v4235_v18 = vpop.f32.mrb[10].mxu1 }
 0x2eb   :  { %v1789_v19 = vadd.f32 %v4235_v18, %v3829_v5  ;;  %1800 = vrot.lane.b32.xlu1 %v1791_v16, %s4820_s30  ;;  %v1742_v20 = vpop.f32.mrb[11].mxu1 }
 0x2ec   :  { %v1788_v21 = vadd.f32 %v3829_v5, %v1742_v20  ;;  %1798 = vrot.lane.b32.xlu0 %v1790_v17, %s4820_s30  ;;  %v4821_v5 = vmov 0.0|0.0   ;;  %v3869_v20 = vld [vmem:[%s5485_s9 + $0x10] sm:$0xff] }
 0x2ed   :  { %v1793_v22 = vmax.f32 %v1789_v19, 0.0  ;;  %4557 = vmatprep.subr.bf16.mxu1 %v4821_v5 }
 0x2ee   :  { %v1792_v23 = vmax.f32 %v1788_v21, 0.0  ;;  %v3870_v21 = vld [vmem:[%s5485_s9 + $0x18] sm:$0xff] }
 0x2ef   :  { %1804 = vrot.lane.b32.xlu1 %v1793_v22, %s4820_s30  ;;  %v4513_v22 = vpack.c.bf16 %v3870_v21, %v3869_v20  ;;  %v3648_v20 = vld [vmem:[%s5489_s13 + $0x8] sm:$0xff] }
 0x2f0   :  { %1802 = vrot.lane.b32.xlu0 %v1792_v23, %s4820_s30 }
 0x35d   :  { %v1801_v24 = vpop.permute.xlu1 %1800 }
 0x35e   :  { %1812 = vst.msk [vmem:[#allocation4 + $0xc] sm:$0xff] %vm1810_vm4, %v1801_v24  ;;  %v1799_v25 = vpop.permute.xlu0 %1798  ;;  %v3872_v24 = vld [vmem:[%s5485_s9 + $0x20] sm:$0xff] }
 0x35f   :  { %1811 = vst.msk [vmem:[#allocation4 + $0x4] sm:$0xff] %vm1810_vm4, %v1799_v25  ;;  %v3873_v25 = vld [vmem:[%s5485_s9 + $0x28] sm:$0xff] }
 0x361   :  { %v1805_v26 = vpop.permute.xlu1 %1804 }
 0x362   :  { %1814 = vst.msk [vmem:[#allocation4 + $0x1c] sm:$0xff] %vm1810_vm4, %v1805_v26  ;;  %v1803_v27 = vpop.permute.xlu0 %1802  ;;  %v4516_v26 = vpack.c.bf16 %v3873_v25, %v3872_v24  ;;  %v3867_v24 = vld [vmem:[#allocation14] ss:$0 sm:$0xff] }
 0x363   :  { %1813 = vst.msk [vmem:[#allocation4 + $0x14] sm:$0xff] %vm1810_vm4, %v1803_v27 }
 0x365   :  { %v2027_v52 = vld [vmem:[#allocation4 + $0xc] sm:$0xff] }
 0x366   :  { %v1823_v30 = vld [vmem:[#allocation4 + $0x2] sm:$0xff]  ;;  %v1824_v31 = vld [vmem:[#allocation4 + $0xa] sm:$0xff] }
 0x367   :  { %4244 = vmatprep.mubr.msk.f32.mxu0 %vm682_vm2, %v1823_v30  ;;  %v1815_v40 = vld [vmem:[#allocation4] sm:$0xff]  ;;  %v1816_v42 = vld [vmem:[#allocation4 + $0x8] sm:$0xff]  ;;  %v4519_v30 = vpack.c.bf16 %v3876_v29, %v3875_v28 }
 0x368   :  { %4245 = vmatmul.mubr.msk.f32.vlgmr.msra.gmra.mrb[4].mxu0 %vm682_vm2, %v1824_v31  ;;  %v2026_v50 = vld [vmem:[#allocation4 + $0x4] sm:$0xff] }
 0x369   :  { %4480 = vmatpush3.bf16.msra.mxu0 %v4477_v15  ;;  %v2029_v57 = vld [vmem:[#allocation4 + $0x1c] sm:$0xff]  ;;  %v2136_v60 = vld [vmem:[#allocation4 + $0x6] sm:$0xff] }
 0x36a   :  { %v1825_v35 = vld [vmem:[#allocation4 + $0x12] sm:$0xff]  ;;  %4482 = vmatprep.subr.bf16.mxu0 %v4481_v32  ;;  %v1826_v36 = vld [vmem:[#allocation4 + $0x1a] sm:$0xff] }
 0x36b   :  { %4247 = vmatprep.mubr.msk.f32.mxu0 %vm682_vm2, %v1825_v35  ;;  %v1817_v45 = vld [vmem:[#allocation4 + $0x10] sm:$0xff]  ;;  %v1818_v47 = vld [vmem:[#allocation4 + $0x18] sm:$0xff]  ;;  %v2249_v2 = vld [vmem:[#allocation4 + $0x20] sm:$0xff] }
 0x36c   :  { %4248 = vmatmul.mubr.msk.f32.gmra.mrb[6].mxu0 %vm682_vm2, %v1826_v36  ;;  %v2028_v55 = vld [vmem:[#allocation4 + $0x14] sm:$0xff]  ;;  %v2139_v1 = vld [vmem:[#allocation4 + $0x1e] sm:$0xff] }
 0x36d   :  { %4484 = vmatpush3.bf16.msra.mxu0 %v4481_v32  ;;  %4258 = vmatprep.mubr.msk.f32.mxu0 %vm682_vm2, %v1815_v40  ;;  %v2137_v62 = vld [vmem:[#allocation4 + $0xe] sm:$0xff]  ;;  %v2138_v63 = vld [vmem:[#allocation4 + $0x16] sm:$0xff]  ;;  %v3881_v36 = vld [vmem:[%s5485_s9 + $0x50] sm:$0xff] }
 0x36e   :  { %4486 = vmatprep.subr.bf16.mxu0 %v4485_v37  ;;  %v3878_v32 = vld [vmem:[%s5485_s9 + $0x40] sm:$0xff] }
 0x36f   :  { %v4522_v34 = vpack.c.bf16 %v3879_v33, %v3878_v32  ;;  %v3884_v40 = vld [vmem:[%s5485_s9 + $0x60] sm:$0xff] }
 0x370   :  { %4259 = vmatmul.mubr.msk.f32.vlgmr.msra.gmra.mrb[4].mxu0 %vm682_vm2, %v1816_v42  ;;  %v3916_v32 = vld [vmem:[%s5490_s14] ss:$0 sm:$0xff] }
 0x371   :  { %4488 = vmatpush3.bf16.msra.mxu0 %v4485_v37  ;;  %4261 = vmatprep.mubr.msk.f32.mxu0 %vm682_vm2, %v1817_v45  ;;  %v3882_v37 = vld [vmem:[%s5485_s9 + $0x58] sm:$0xff] }
 0x372   :  { %4490 = vmatprep.subr.bf16.mxu0 %v4489_v41  ;;  %v4525_v38 = vpack.c.bf16 %v3882_v37, %v3881_v36 }
 0x374   :  { %4262 = vmatmul.mubr.msk.f32.gmra.mrb[6].mxu0 %vm682_vm2, %v1818_v47 }
 0x375   :  { %4492 = vmatpush3.bf16.msra.mxu0 %v4489_v41  ;;  %4272 = vmatprep.mubr.msk.f32.mxu0 %vm682_vm2, %v2026_v50  ;;  %v3885_v41 = vld [vmem:[%s5485_s9 + $0x68] sm:$0xff]  ;;  %v4534_v50 = vpack.c.bf16 %v3891_v49, %v3890_v48 }
 0x376   :  { %4494 = vmatprep.subr.bf16.mxu0 %v4493_v46 }
 0x378   :  { %4273 = vmatmul.mubr.msk.f32.vlgmr.msra.gmra.mrb[4].mxu0 %vm682_vm2, %v2027_v52  ;;  %v3893_v52 = vld [vmem:[%s5485_s9 + $0x90] sm:$0xff] }
 0x379   :  { %4496 = vmatpush3.bf16.msra.mxu0 %v4493_v46  ;;  %4275 = vmatprep.mubr.msk.f32.mxu0 %vm682_vm2, %v2028_v55  ;;  %v4537_v54 = vpack.c.bf16 %v3894_v53, %v3893_v52 }
 0x37a   :  { %4498 = vmatprep.subr.bf16.mxu0 %v4497_v51 }
 0x37c   :  { %4276 = vmatmul.mubr.msk.f32.gmra.mrb[6].mxu0 %vm682_vm2, %v2029_v57  ;;  %v3897_v57 = vld [vmem:[%s5485_s9 + $0xa8] sm:$0xff] }
 0x37d   :  { %4500 = vmatpush3.bf16.msra.mxu0 %v4497_v51  ;;  %4286 = vmatprep.mubr.msk.f32.mxu0 %vm682_vm2, %v2136_v60  ;;  %v3899_v60 = vld [vmem:[%s5485_s9 + $0xb0] sm:$0xff] }
 0x37e   :  { %4502 = vmatprep.subr.bf16.mxu0 %v4501_v56 }
 0x380   :  { %4287 = vmatmul.mubr.msk.f32.vlgmr.msra.gmra.mrb[4].mxu0 %vm682_vm2, %v2137_v62 }
 0x381   :  { %4504 = vmatpush3.bf16.msra.mxu0 %v4501_v56  ;;  %4289 = vmatprep.mubr.msk.f32.mxu0 %vm682_vm2, %v2138_v63  ;;  %v3896_v56 = vld [vmem:[%s5485_s9 + $0xa0] sm:$0xff] }
 0x382   :  { %4506 = vmatprep.subr.bf16.mxu0 %v4505_v61  ;;  %v4540_v58 = vpack.c.bf16 %v3897_v57, %v3896_v56 }
 0x384   :  { %4290 = vmatmul.mubr.msk.f32.gmra.mrb[6].mxu0 %vm682_vm2, %v2139_v1  ;;  %v3902_v1 = vld [vmem:[%s5485_s9 + $0xc0] sm:$0xff] }
 0x385   :  { %4508 = vmatpush3.bf16.msra.mxu0 %v4505_v61  ;;  %4300 = vmatprep.mubr.msk.f32.mxu0 %vm682_vm2, %v1816_v42  ;;  %v4528_v42 = vpack.c.bf16 %v3885_v41, %v3884_v40  ;;  %v3900_v61 = vld [vmem:[%s5485_s9 + $0xb8] sm:$0xff] }
 0x386   :  { %4509 = vmatprep.subr.bf16.mxu0 %v4821_v5  ;;  %v4543_v62 = vpack.c.bf16 %v3900_v61, %v3899_v60 }
 0x388   :  { %4301 = vmatmul.mubr.msk.f32.vlgmr.msra.gmra.mrb[4].mxu0 %vm682_vm2, %v1817_v45  ;;  %v3888_v45 = vld [vmem:[%s5485_s9 + $0x78] sm:$0xff] }
 0x389   :  { %4303 = vmatprep.mubr.msk.f32.mxu0 %vm682_vm2, %v1818_v47  ;;  %4511 = vmatpush3.bf16.msra.mxu0 %v4510_v6  ;;  %v4531_v46 = vpack.c.bf16 %v3888_v45, %v3887_v44  ;;  %v3905_v6 = vld [vmem:[%s5485_s9 + $0xd0] sm:$0xff] }
 0x38a   :  { %4512 = vmatprep.subr.bf16.mxu0 %v4821_v5 }
 0x38c   :  { %4304 = vmatmul.mubr.msk.f32.gmra.mrb[6].mxu0 %vm682_vm2, %v2249_v2  ;;  %v3903_v2 = vld [vmem:[%s5485_s9 + $0xc8] sm:$0xff] }
 0x38d   :  { %4310 = vmatprep.mubr.msk.f32.mxu0 %vm4822_vm5, %v4818_v0  ;;  %v4546_v3 = vpack.c.bf16 %v3903_v2, %v3902_v1 }
 0x45b   :  { %v4302_v8 = vpop.f32.mrb[4].mxu0 }
 0x45c   :  { %v2364_v9 = vadd.f32 %v4302_v8, %v3866_v7  ;;  %v2333_v10 = vpop.f32.mrb[5].mxu0 }
 0x45d   :  { %v2363_v11 = vadd.f32 %v3866_v7, %v2333_v10  ;;  %v3908_v10 = vld [vmem:[%s5485_s9 + $0xe0] sm:$0xff] }
 0x45e   :  { %v2368_v12 = vmax.f32 %v2364_v9, 0.0 }
 0x45f   :  { %v2367_v13 = vmax.f32 %v2363_v11, 0.0  ;;  %v4305_v14 = vpop.f32.mrb[6].mxu0  ;;  %v3909_v11 = vld [vmem:[%s5485_s9 + $0xe8] sm:$0xff] }
 0x460   :  { %2372 = vst.msk [vmem:[#allocation5 + $0x8] sm:$0xff] %vm707_vm3, %v2368_v12  ;;  %v2366_v15 = vadd.f32 %v4305_v14, %v3866_v7  ;;  %v2343_v16 = vpop.f32.mrb[7].mxu0  ;;  %v4552_v12 = vpack.c.bf16 %v3909_v11, %v3908_v10  ;;  %v3911_v14 = vld [vmem:[%s5485_s9 + $0xf0] sm:$0xff] }
 0x461   :  { %2371 = vst.msk [vmem:[#allocation5] sm:$0xff] %vm707_vm3, %v2367_v13  ;;  %v2365_v17 = vadd.f32 %v3866_v7, %v2343_v16  ;;  %v3906_v7 = vld [vmem:[%s5485_s9 + $0xd8] sm:$0xff] }
 0x462   :  { %v2370_v18 = vmax.f32 %v2366_v15, 0.0  ;;  %v4549_v8 = vpack.c.bf16 %v3906_v7, %v3905_v6  ;;  %v3912_v15 = vld [vmem:[%s5485_s9 + $0xf8] sm:$0xff] }
 0x463   :  { %v2369_v19 = vmax.f32 %v2365_v17, 0.0  ;;  %v4555_v16 = vpack.c.bf16 %v3912_v15, %v3911_v14 }
 0x464   :  { %2374 = vst.msk [vmem:[#allocation5 + $0x18] sm:$0xff] %vm707_vm3, %v2370_v18 }
 0x465   :  { %2373 = vst.msk [vmem:[#allocation5 + $0x10] sm:$0xff] %vm707_vm3, %v2369_v19  ;;  %v3647_v19 = vld [vmem:[%s5489_s13] sm:$0xff] }
 0x466   :  { %v4558_v21 = vpack.c.bf16 %v3648_v20, %v3647_v19 }
 0x467   :  { %v2694_v39 = vld [vmem:[#allocation5 + $0x8] sm:$0x3]  ;;  %v2772_v43 = vld [vmem:[#allocation5 + $0xa] sm:$0x3]  ;;  %v2850_v47 = vld [vmem:[#allocation5 + $0xc] sm:$0x3] }
 0x468   :  { %v2383_v23 = vld [vmem:[#allocation5] sm:$0x3]  ;;  %v2460_v27 = vld [vmem:[#allocation5 + $0x2] sm:$0x3]  ;;  %v2538_v31 = vld [vmem:[#allocation5 + $0x4] sm:$0x3]  ;;  %4559 = vmatpush3.bf16.msra.mxu1 %v4558_v21 }
 0x469   :  { %4311 = vmatmul.mubr.msk.f32.vlgmr.msra.gmra.mrb[8].mxu0 %vm707_vm3, %v2383_v23  ;;  %v2616_v35 = vld [vmem:[#allocation5 + $0x6] sm:$0x3]  ;;  %v2928_v51 = vld [vmem:[#allocation5 + $0xe] sm:$0x3]  ;;  %4560 = vmatprep.subr.bf16.mxu1 %v4821_v5 }
 0x46a   :  { %4514 = vmatpush3.bf16.msra.mxu0 %v4513_v22  ;;  %4317 = vmatprep.mubr.msk.f32.mxu0 %vm4822_vm5, %v4818_v0  ;;  %v3649_v22 = vld [vmem:[%s5489_s13 + $0x10] sm:$0xff] }
 0x46b   :  { %4515 = vmatprep.subr.bf16.mxu0 %v4821_v5  ;;  %v3318_v9 = vld [vmem:[#allocation5 + $0x18] sm:$0x3]  ;;  %v3396_v13 = vld [vmem:[#allocation5 + $0x1a] sm:$0x3]  ;;  %v3474_v17 = vld [vmem:[#allocation5 + $0x1c] sm:$0x3] }
 0x46c   :  { %v3006_v55 = vld [vmem:[#allocation5 + $0x10] sm:$0x3]  ;;  %v3084_v59 = vld [vmem:[#allocation5 + $0x12] sm:$0x3]  ;;  %v3162_v63 = vld [vmem:[#allocation5 + $0x14] sm:$0x3] }
 0x46d   :  { %v3240_v4 = vld [vmem:[#allocation5 + $0x16] sm:$0x3]  ;;  %v3552_v18 = vld [vmem:[#allocation5 + $0x1e] sm:$0x3] }
 0x471   :  { %4318 = vmatmul.mubr.msk.f32.vlgmr.msra.gmra.mrb[8].mxu0 %vm707_vm3, %v2460_v27 }
 0x472   :  { %4517 = vmatpush3.bf16.msra.mxu0 %v4516_v26  ;;  %4324 = vmatprep.mubr.msk.f32.mxu0 %vm4822_vm5, %v4818_v0  ;;  %v3914_v26 = vld [vmem:[%s5487_s11] ss:$0 sm:$0xff]  ;;  %s4781_s11 = scalar_lea.vmem %s3740_s28, 32 }
 0x473   :  { %4518 = vmatprep.subr.bf16.mxu0 %v4821_v5  ;;  %p4782_p12 = scmp.ne.s32.totalorder %s3740_s28, %s4781_s11  ;;  %p4787_p0 = scmp.lt.s32.totalorder %s4781_s11, %s4781_s11 }
 0x475   :  { %p4788_p1 = por %p4787_p0, %p4786_p13 }
 0x477   :  { %p4789_p2 = pnand %p4788_p1, %p4782_p12 }
 0x479   :  { %4325 = vmatmul.mubr.msk.f32.vlgmr.msra.gmra.mrb[8].mxu0 %vm707_vm3, %v2538_v31 }
 0x47a   :  { %4520 = vmatpush3.bf16.msra.mxu0 %v4519_v30  ;;  %4331 = vmatprep.mubr.msk.f32.mxu0 %vm4822_vm5, %v4818_v0 }
 0x47b   :  { %4521 = vmatprep.subr.bf16.mxu0 %v4821_v5 }
 0x481   :  { %4332 = vmatmul.mubr.msk.f32.vlgmr.msra.gmra.mrb[8].mxu0 %vm707_vm3, %v2616_v35 }
 0x482   :  { %4523 = vmatpush3.bf16.msra.mxu0 %v4522_v34  ;;  %4338 = vmatprep.mubr.msk.f32.mxu0 %vm4822_vm5, %v4818_v0 }
 0x483   :  { %4524 = vmatprep.subr.bf16.mxu0 %v4821_v5 }
 0x489   :  { %4339 = vmatmul.mubr.msk.f32.vlgmr.msra.gmra.mrb[8].mxu0 %vm707_vm3, %v2694_v39 }
 0x48a   :  { %4526 = vmatpush3.bf16.msra.mxu0 %v4525_v38  ;;  %4345 = vmatprep.mubr.msk.f32.mxu0 %vm4822_vm5, %v4818_v0 }
 0x48b   :  { %4527 = vmatprep.subr.bf16.mxu0 %v4821_v5 }
 0x491   :  { %4346 = vmatmul.mubr.msk.f32.vlgmr.msra.gmra.mrb[8].mxu0 %vm707_vm3, %v2772_v43 }
 0x492   :  { %4529 = vmatpush3.bf16.msra.mxu0 %v4528_v42  ;;  %4352 = vmatprep.mubr.msk.f32.mxu0 %vm4822_vm5, %v4818_v0 }
 0x493   :  { %4530 = vmatprep.subr.bf16.mxu0 %v4821_v5 }
 0x499   :  { %4353 = vmatmul.mubr.msk.f32.vlgmr.msra.gmra.mrb[8].mxu0 %vm707_vm3, %v2850_v47 }
 0x49a   :  { %4532 = vmatpush3.bf16.msra.mxu0 %v4531_v46  ;;  %4359 = vmatprep.mubr.msk.f32.mxu0 %vm4822_vm5, %v4818_v0 }
 0x49b   :  { %4533 = vmatprep.subr.bf16.mxu0 %v4821_v5 }
 0x4a1   :  { %4360 = vmatmul.mubr.msk.f32.vlgmr.msra.gmra.mrb[8].mxu0 %vm707_vm3, %v2928_v51 }
 0x4a2   :  { %4535 = vmatpush3.bf16.msra.mxu0 %v4534_v50  ;;  %4366 = vmatprep.mubr.msk.f32.mxu0 %vm4822_vm5, %v4818_v0 }
 0x4a3   :  { %4536 = vmatprep.subr.bf16.mxu0 %v4821_v5 }
 0x4a9   :  { %4367 = vmatmul.mubr.msk.f32.vlgmr.msra.gmra.mrb[8].mxu0 %vm707_vm3, %v3006_v55 }
 0x4aa   :  { %4538 = vmatpush3.bf16.msra.mxu0 %v4537_v54  ;;  %4373 = vmatprep.mubr.msk.f32.mxu0 %vm4822_vm5, %v4818_v0 }
 0x4ab   :  { %4539 = vmatprep.subr.bf16.mxu0 %v4821_v5 }
 0x4b1   :  { %4374 = vmatmul.mubr.msk.f32.vlgmr.msra.gmra.mrb[8].mxu0 %vm707_vm3, %v3084_v59 }
 0x4b2   :  { %4541 = vmatpush3.bf16.msra.mxu0 %v4540_v58  ;;  %4380 = vmatprep.mubr.msk.f32.mxu0 %vm4822_vm5, %v4818_v0 }
 0x4b3   :  { %4542 = vmatprep.subr.bf16.mxu0 %v4821_v5 }
 0x4b9   :  { %4381 = vmatmul.mubr.msk.f32.vlgmr.msra.gmra.mrb[8].mxu0 %vm707_vm3, %v3162_v63 }
 0x4ba   :  { %4544 = vmatpush3.bf16.msra.mxu0 %v4543_v62  ;;  %4387 = vmatprep.mubr.msk.f32.mxu0 %vm4822_vm5, %v4818_v0 }
 0x4bb   :  { %4545 = vmatprep.subr.bf16.mxu0 %v4821_v5 }
 0x4c1   :  { %4388 = vmatmul.mubr.msk.f32.vlgmr.msra.gmra.mrb[8].mxu0 %vm707_vm3, %v3240_v4 }
 0x4c2   :  { %4547 = vmatpush3.bf16.msra.mxu0 %v4546_v3  ;;  %4394 = vmatprep.mubr.msk.f32.mxu0 %vm4822_vm5, %v4818_v0 }
 0x4c3   :  { %4548 = vmatprep.subr.bf16.mxu0 %v4821_v5 }
 0x4c9   :  { %4395 = vmatmul.mubr.msk.f32.vlgmr.msra.gmra.mrb[8].mxu0 %vm707_vm3, %v3318_v9 }
 0x4ca   :  { %4550 = vmatpush3.bf16.msra.mxu0 %v4549_v8  ;;  %4401 = vmatprep.mubr.msk.f32.mxu0 %vm4822_vm5, %v4818_v0 }
 0x4cb   :  { %4551 = vmatprep.subr.bf16.mxu0 %v4821_v5 }
 0x4d1   :  { %4402 = vmatmul.mubr.msk.f32.vlgmr.msra.gmra.mrb[8].mxu0 %vm707_vm3, %v3396_v13 }
 0x4d2   :  { %4553 = vmatpush3.bf16.msra.mxu0 %v4552_v12  ;;  %4408 = vmatprep.mubr.msk.f32.mxu0 %vm4822_vm5, %v4818_v0 }
 0x4d3   :  { %4554 = vmatprep.subr.bf16.mxu0 %v4821_v5  ;;  %v3915_v5 = vld [vmem:[%s5488_s12] ss:$0 sm:$0xff] }
 0x4d9   :  { %4409 = vmatmul.mubr.msk.f32.vlgmr.msra.gmra.mrb[8].mxu0 %vm707_vm3, %v3474_v17 }
 0x4da   :  { %4556 = vmatpush3.bf16.msra.mxu0 %v4555_v16  ;;  %4415 = vmatprep.mubr.msk.f32.mxu0 %vm4822_vm5, %v4818_v0  ;;  %v3650_v0 = vld [vmem:[%s5489_s13 + $0x18] sm:$0xff] }
 0x4db   :  { %v4561_v23 = vpack.c.bf16 %v3650_v0, %v3649_v22 }
 0x4dd   :  { %4562 = vmatpush3.bf16.msra.mxu1 %v4561_v23 }
 0x4e1   :  { %4416 = vmatmul.mubr.msk.f32.vlgmr.msra.gmra.mrb[8].mxu0 %vm707_vm3, %v3552_v18 }
 0x5b4   :  { %v3625_v25 = vpop.f32.mrb[8].mxu0 }
 0x5b5   :  { %v4567_v27 = vadd.f32 %v3867_v24, %v3625_v25  ;;  %v4417_v28 = vpop.f32.mrb[9].mxu0 }
 0x5b7   :  { %v3637_v29 = vmul.f32 %v4567_v27, %v3914_v26 }
 0x5b9   :  { %v3645_v30 = vadd.f32 %v3915_v5, %v3637_v29 }
 0x5bb   :  { %v3646_v31 = vmax.f32 %v3645_v30, 0.0 }
 0x5bd   :  { %4427 = vmatmul.mubr.msk.f32.vlgmr.msra.gmra.mrb[12].mxu1 %vm682_vm2, %v3646_v31 }
 0x690   :  { %v3727_v33 = vpop.f32.mrb[12].mxu1 }
 0x691   :  { %v3728_v34 = vadd.f32 %v3916_v32, %v3727_v33  ;;  %v4428_v35 = vpop.f32.mrb[13].mxu1 }
 0x693   :  { %3732 = vst.msk [vmem:[#allocation15] sm:$0x3] %vm3731_vm6, %v3728_v34 }
 0x694   :  { %4792 = shalt.err (!%p4789_p2)
}
 0x695   :  { %s4793_s0 = scalar_lea.hbm %s5491_s15, 32 }
 0x696   :  { %p4794_p3 = scmp.ne.s32.totalorder %s5491_s15, %s4793_s0  ;;  %p4797_p4 = scmp.lt.u32.totalorder %s4793_s0, %s5491_s15 }
 0x698   :  { %p4799_p5 = pnand %p4797_p4, %p4794_p3 }
 0x69a   :  { %4802 = shalt.err (!%p4799_p5)
}
 0x69b   :  { %3742 = dma.vmem_to_hbm [thread:$0]  %s3740_s28, 32, %s5491_s15, [#allocation8]  }
 0x69c   :  { %4809 = dma.done.wait [#allocation8], 32  }
 0x69d   :  { %4810 = vsyncadd [#allocation8], 4294967264 }
 0x69e   :  { %3746 = vsyncpa [#allocation7], 1 }
 0x69f   :  { %3747 = vsyncpa [#allocation10], 1 }
 0x6a0   :  { %3748 = vsyncpa [#allocation13], 1 }
 0x6a1   :  { %3749 = vsyncpa [#allocation8], 1 }

</bundles_post_ra>
